<compile_context>
chip_gen: v7x
topology: tpu7x:2x2x1
jax: 0.10.0
libtpu: 0.0.40
codegen_flags: <defaults>
</compile_context>

<pallas_src>
import functools

import jax
import jax.numpy as jnp
from jax.experimental import pallas as pl
from jax.experimental.pallas import tpu as pltpu

LAYER_SIZES = (64, 32, 16, 8)   # layer1_no .. layer4_no from the PyTorch module
BN_EPS = 1e-5
LANES = 128                     # padded lane width for every tensor in the slab


def _round8(n):
    return (n + 7) // 8 * 8


# ------------------------- static slab layout --------------------------------


def _build_layout():
    """Static row layout of the packed parameter slab (everything 128-padded).

    Per residual block:
      row vec+0 : bn1.gamma
      row vec+1 : bn1.beta
      row vec+2 : bn2.gamma
      row vec+3 : bn2.beta
      row vec+4 : linear2.bias + shortcut.bias   [linear1.bias dropped]
      rows w1   : linear1.weight   (128 x 128, zero-padded)
      rows w2   : linear2.weight   (128 x 128, zero-padded)
      rows ws   : shortcut.weight  (128 x 128, zero-padded)
    followed by the final Linear, zero-padded to (128, 128), and its bias row.
    """
    row = 0

    def alloc(nrows):
        nonlocal row
        start = row
        row += _round8(nrows)
        return start

    blocks = []
    for _ in range(len(LAYER_SIZES)):
        blocks.append((alloc(5), alloc(LANES), alloc(LANES), alloc(LANES)))
    wout_row = alloc(LANES)
    bout_row = alloc(1)
    return tuple(blocks), wout_row, bout_row, row


# ----------------------------- kernel ---------------------------------------


def _bn_relu(x, gamma, beta, inv_n):
    """relu(BatchNorm1d(x)) with batch stats — single pass, fused scale/shift.

    Padded lanes: x == 0 there and gamma == beta == 0, so scale == shift == 0
    and the output stays exactly 0.
    """
    s1 = jnp.sum(x, axis=0, keepdims=True)
    s2 = jnp.sum(x * x, axis=0, keepdims=True)
    mu = s1 * inv_n
    var = jnp.maximum(s2 * inv_n - mu * mu, 0.0)   # biased var, guarded vs cancellation
    scale = gamma * jax.lax.rsqrt(var + BN_EPS)
    shift = beta - mu * scale
    return jnp.maximum(x * scale + shift, 0.0)


def _small_resnet_kernel(layout, inv_n, x_ref, slab_ref, out_ref):
    blocks, wout_row, bout_row = layout
    x = x_ref[...]                                          # (B, 128) f32

    for (vec, w1_r, w2_r, ws_r) in blocks:
        g1 = slab_ref[vec + 0:vec + 1, :]
        b1 = slab_ref[vec + 1:vec + 2, :]
        g2 = slab_ref[vec + 2:vec + 3, :]
        b2 = slab_ref[vec + 3:vec + 4, :]
        bc = slab_ref[vec + 4:vec + 5, :]                   # linear2.bias + shortcut.bias
        w1 = slab_ref[w1_r:w1_r + LANES, :]                 # full (128, 128) tiles
        w2 = slab_ref[w2_r:w2_r + LANES, :]
        ws = slab_ref[ws_r:ws_r + LANES, :]

        h = _bn_relu(x, g1, b1, inv_n)
        # linear1.bias omitted: cancelled by bn2's mean subtraction.
        h = jnp.dot(h, w1, preferred_element_type=jnp.float32)
        h = _bn_relu(h, g2, b2, inv_n)
        h = jnp.dot(h, w2, preferred_element_type=jnp.float32)
        # Shortcut matmul is off the critical path; do NOT merge it into w1.
        sc = jnp.dot(x, ws, preferred_element_type=jnp.float32)
        x = jnp.maximum(h + sc + bc, 0.0)

    # Final Linear, 128-lane padded -> unmasked, lane-dense store.
    w_out = slab_ref[wout_row:wout_row + LANES, :]
    b_out = slab_ref[bout_row:bout_row + 1, :]
    out_ref[...] = jnp.dot(x, w_out, preferred_element_type=jnp.float32) + b_out


# --------------------------- parameter setup ---------------------------------


def _init_linear(key, fan_in, fan_out):
    """PyTorch-style uniform(-1/sqrt(fan_in), 1/sqrt(fan_in)); W pre-transposed."""
    kw, kb = jax.random.split(key)
    bound = 1.0 / jnp.sqrt(jnp.float32(fan_in))
    w = jax.random.uniform(kw, (fan_in, fan_out), jnp.float32, -bound, bound)
    b = jax.random.uniform(kb, (1, fan_out), jnp.float32, -bound, bound)
    return w, b


def init_params(key, in_dim, out_dim):
    """Flat PyTorch-ordered parameter list (incl. linear1.bias, for the ref)."""
    params = []
    dims = (in_dim,) + LAYER_SIZES
    for i in range(len(LAYER_SIZES)):
        cin, cout = dims[i], dims[i + 1]
        key, k1, k2, k3 = jax.random.split(key, 4)
        params += [jnp.ones((1, cin), jnp.float32), jnp.zeros((1, cin), jnp.float32)]    # bn1
        params += list(_init_linear(k1, cin, cout))                                       # linear1
        params += [jnp.ones((1, cout), jnp.float32), jnp.zeros((1, cout), jnp.float32)]   # bn2
        params += list(_init_linear(k2, cout, cout))                                      # linear2
        params += list(_init_linear(k3, cin, cout))                                       # shortcut
    key, kf = jax.random.split(key)
    params += list(_init_linear(kf, LAYER_SIZES[-1], out_dim))                            # final
    return params


def pack_params(params, in_dim, out_dim):
    """Pack all parameters into one zero-padded (rows, 128) f32 slab."""
    blocks, wout_row, bout_row, total_rows = _build_layout()
    slab = jnp.zeros((total_rows, LANES), jnp.float32)
    dims = (in_dim,) + LAYER_SIZES
    idx = 0
    for i, (vec, w1_r, w2_r, ws_r) in enumerate(blocks):
        cin, cout = dims[i], dims[i + 1]
        g1, b1, w1, _bb1, g2, b2, w2, bb2, ws, bs = params[idx:idx + 10]
        idx += 10
        slab = slab.at[vec + 0, :cin].set(g1[0])
        slab = slab.at[vec + 1, :cin].set(b1[0])
        slab = slab.at[vec + 2, :cout].set(g2[0])
        slab = slab.at[vec + 3, :cout].set(b2[0])
        slab = slab.at[vec + 4, :cout].set(bb2[0] + bs[0])   # fold the two bias adds
        slab = slab.at[w1_r:w1_r + cin, :cout].set(w1)       # _bb1 dropped (cancelled by bn2)
        slab = slab.at[w2_r:w2_r + cout, :cout].set(w2)
        slab = slab.at[ws_r:ws_r + cin, :cout].set(ws)
    w_out, b_out = params[idx], params[idx + 1]
    slab = slab.at[wout_row:wout_row + LAYER_SIZES[-1], :out_dim].set(w_out)
    slab = slab.at[bout_row, :out_dim].set(b_out[0])
    return slab


# ------------------------------ wrapper --------------------------------------


@functools.partial(jax.jit, static_argnames=("out_dim",))
def small_residual_network(x, slab, *, out_dim):
    """Forward pass.

    x: (B, in_dim) for one mini-batch, or (G, B, in_dim) for G INDEPENDENT
       mini-batches (each grid step computes its own BatchNorm batch stats,
       exactly like G separate PyTorch forward() calls).
    """
    squeeze = x.ndim == 2
    if squeeze:
        x = x[None]
    G, B, in_dim = x.shape
    blocks, wout_row, bout_row, total_rows = _build_layout()
    assert slab.shape == (total_rows, LANES)

    # Zero-pad features to 128 lanes: padded lanes stay exactly 0 through BN
    # (gamma = beta = 0 there), ReLU, and the zero-padded weight tiles.
    xp = jnp.zeros((G, B, LANES), jnp.float32).at[:, :, :in_dim].set(
        x.astype(jnp.float32))

    kernel = functools.partial(
        _small_resnet_kernel, (blocks, wout_row, bout_row), 1.0 / B)

    y = pl.pallas_call(
        kernel,
        out_shape=jax.ShapeDtypeStruct((G, B, LANES), jnp.float32),
        grid=(G,),
        in_specs=[
            # One mini-batch per grid step (leading dim squeezed away).
            pl.BlockSpec((None, B, LANES), lambda g: (g, 0, 0)),
            # Parameter slab pinned to block (0, 0): DMA'd once, stays resident.
            pl.BlockSpec((total_rows, LANES), lambda g: (0, 0)),
        ],
        out_specs=pl.BlockSpec((None, B, LANES), lambda g: (g, 0, 0)),
        # Grid steps are independent mini-batches -> shard across TCs on v7x.
        compiler_params=pltpu.CompilerParams(
            dimension_semantics=("parallel",)),
    )(xp, slab)

    y = y[..., :out_dim]
    return y[0] if squeeze else y


# --------------------------- reference (plain JAX) ---------------------------


def _dot_hi(a, b):
    return jnp.dot(a, b, precision=jax.lax.Precision.HIGHEST)


def _bn_ref(x, gamma, beta):
    mu = jnp.mean(x, axis=0, keepdims=True)
    var = jnp.mean((x - mu) ** 2, axis=0, keepdims=True)   # biased variance
    return (x - mu) * jax.lax.rsqrt(var + BN_EPS) * gamma + beta


def reference_forward(x, params):
    """PyTorch-semantics reference: two-pass BN, linear1 bias included."""
    x = x.astype(jnp.float32)
    idx = 0
    for _ in range(len(LAYER_SIZES)):
        g1, b1, w1, bb1, g2, b2, w2, bb2, ws, bs = params[idx:idx + 10]
        idx += 10
        h = jnp.maximum(_bn_ref(x, g1, b1), 0.0)
        h = _dot_hi(h, w1) + bb1
        h = jnp.maximum(_bn_ref(h, g2, b2), 0.0)
        h = _dot_hi(h, w2) + bb2
        x = jnp.maximum(h + (_dot_hi(x, ws) + bs), 0.0)
    return _dot_hi(x, params[idx]) + params[idx + 1]


# ------------------------------- main ----------------------------------------

if __name__ == "__main__":
    in_dim, out_dim, batch, n_groups = 4, 2, 8, 4   # cartpole-like state -> 2 outputs

    key = jax.random.PRNGKey(0)
    kx, kp = jax.random.split(key)
    x = jax.random.normal(kx, (n_groups, batch, in_dim), jnp.float32)
    params = init_params(kp, in_dim, out_dim)
    slab = pack_params(params, in_dim, out_dim)

    # Multi-mini-batch path (grid over independent batches, slab resident).
    y = jax.block_until_ready(small_residual_network(x, slab, out_dim=out_dim))
    assert y.shape == (n_groups, batch, out_dim)
    y_ref = jnp.stack([reference_forward(x[g], params) for g in range(n_groups)])
    # Tolerance allows for MXU contraction-precision differences (bf16 passes)
    # vs the f32 reference; real wiring/BN/bias bugs produce O(0.1-1) errors.
    assert jnp.allclose(y, y_ref, atol=2e-2, rtol=2e-2), (y, y_ref)

    # Single mini-batch (2-D) path.
    y1 = jax.block_until_ready(small_residual_network(x[0], slab, out_dim=out_dim))
    assert y1.shape == (batch, out_dim)
    assert jnp.allclose(y1, reference_forward(x[0], params), atol=2e-2, rtol=2e-2)

    print("KERNEL_OK")
</pallas_src>

<mosaic_0001>
module attributes {stable_mosaic.version = 11 : i64} {
  func.func @_small_resnet_kernel(%arg0: i32, %arg1: memref<1x8x128xf32, #tpu.memory_space<vmem>>, %arg2: memref<1704x128xf32, #tpu.memory_space<vmem>>, %arg3: memref<1x8x128xf32, #tpu.memory_space<vmem>>) attributes {dimension_semantics = [#tpu.dimension_semantics<parallel>], iteration_bounds = array<i64: 4>, scalar_prefetch = 0 : i64, scratch_operands = 0 : i64, tpu.core_type = #tpu.core_type<tc>, window_params = [{transform_indices = @transform_0, window_bounds = array<i64: 1, 8, 128>}, {pipeline_mode = #tpu.pipeline_mode<synchronous>, transform_indices = @transform_1, window_bounds = array<i64: 1704, 128>}, {transform_indices = @transform_2, window_bounds = array<i64: 1, 8, 128>}]} {
    %c0 = arith.constant 0 : index
    %c0_0 = arith.constant 0 : index
    %c0_1 = arith.constant 0 : index
    %0 = vector.load %arg1[%c0, %c0_0, %c0_1] : memref<1x8x128xf32, #tpu.memory_space<vmem>>, vector<1x8x128xf32>
    %1 = vector.shape_cast %0 : vector<1x8x128xf32> to vector<8x128xf32>
    %c0_2 = arith.constant 0 : index
    %c0_3 = arith.constant 0 : index
    %2 = vector.load %arg2[%c0_2, %c0_3] : memref<1704x128xf32, #tpu.memory_space<vmem>>, vector<1x128xf32>
    %c1 = arith.constant 1 : index
    %c0_4 = arith.constant 0 : index
    %3 = vector.load %arg2[%c1, %c0_4] : memref<1704x128xf32, #tpu.memory_space<vmem>>, vector<1x128xf32>
    %c2 = arith.constant 2 : index
    %c0_5 = arith.constant 0 : index
    %4 = vector.load %arg2[%c2, %c0_5] : memref<1704x128xf32, #tpu.memory_space<vmem>>, vector<1x128xf32>
    %c3 = arith.constant 3 : index
    %c0_6 = arith.constant 0 : index
    %5 = vector.load %arg2[%c3, %c0_6] : memref<1704x128xf32, #tpu.memory_space<vmem>>, vector<1x128xf32>
    %c4 = arith.constant 4 : index
    %c0_7 = arith.constant 0 : index
    %6 = vector.load %arg2[%c4, %c0_7] : memref<1704x128xf32, #tpu.memory_space<vmem>>, vector<1x128xf32>
    %c8 = arith.constant 8 : index
    %c0_8 = arith.constant 0 : index
    %7 = vector.load %arg2[%c8, %c0_8] : memref<1704x128xf32, #tpu.memory_space<vmem>>, vector<128x128xf32>
    %c136 = arith.constant 136 : index
    %c0_9 = arith.constant 0 : index
    %8 = vector.load %arg2[%c136, %c0_9] : memref<1704x128xf32, #tpu.memory_space<vmem>>, vector<128x128xf32>
    %c264 = arith.constant 264 : index
    %c0_10 = arith.constant 0 : index
    %9 = vector.load %arg2[%c264, %c0_10] : memref<1704x128xf32, #tpu.memory_space<vmem>>, vector<128x128xf32>
    %cst = arith.constant dense<0.000000e+00> : vector<128xf32>
    %10 = vector.multi_reduction <add>, %1, %cst [0] : vector<8x128xf32> to vector<128xf32>
    %11 = vector.shape_cast %10 : vector<128xf32> to vector<1x128xf32>
    %12 = arith.mulf %1, %1 : vector<8x128xf32>
    %cst_11 = arith.constant dense<0.000000e+00> : vector<128xf32>
    %13 = vector.multi_reduction <add>, %12, %cst_11 [0] : vector<8x128xf32> to vector<128xf32>
    %14 = vector.shape_cast %13 : vector<128xf32> to vector<1x128xf32>
    %cst_12 = arith.constant 1.250000e-01 : f32
    %15 = vector.broadcast %cst_12 : f32 to vector<1x128xf32>
    %16 = arith.mulf %11, %15 : vector<1x128xf32>
    %cst_13 = arith.constant 1.250000e-01 : f32
    %17 = vector.broadcast %cst_13 : f32 to vector<1x128xf32>
    %18 = arith.mulf %14, %17 : vector<1x128xf32>
    %19 = arith.mulf %16, %16 : vector<1x128xf32>
    %20 = arith.subf %18, %19 : vector<1x128xf32>
    %cst_14 = arith.constant 0.000000e+00 : f32
    %21 = vector.broadcast %cst_14 : f32 to vector<1x128xf32>
    %22 = arith.maximumf %20, %21 : vector<1x128xf32>
    %cst_15 = arith.constant 9.99999974E-6 : f32
    %23 = vector.broadcast %cst_15 : f32 to vector<1x128xf32>
    %24 = arith.addf %22, %23 : vector<1x128xf32>
    %25 = math.rsqrt %24 : vector<1x128xf32>
    %26 = arith.mulf %2, %25 : vector<1x128xf32>
    %27 = arith.mulf %16, %26 : vector<1x128xf32>
    %28 = arith.subf %3, %27 : vector<1x128xf32>
    %29 = vector.broadcast %26 : vector<1x128xf32> to vector<8x128xf32>
    %30 = arith.mulf %1, %29 : vector<8x128xf32>
    %31 = vector.broadcast %28 : vector<1x128xf32> to vector<8x128xf32>
    %32 = arith.addf %30, %31 : vector<8x128xf32>
    %cst_16 = arith.constant 0.000000e+00 : f32
    %33 = vector.broadcast %cst_16 : f32 to vector<8x128xf32>
    %34 = arith.maximumf %32, %33 : vector<8x128xf32>
    %cst_17 = arith.constant dense<0.000000e+00> : vector<8x128xf32>
    %35 = tpu.matmul %34, %7, %cst_17 {dimension_numbers = #tpu.dot_dimension_numbers<[1], [0], [0], [1], [0, 0, 1, 1], [], []>} : vector<8x128xf32>, vector<128x128xf32>, vector<8x128xf32> -> vector<8x128xf32>
    %cst_18 = arith.constant dense<0.000000e+00> : vector<128xf32>
    %36 = vector.multi_reduction <add>, %35, %cst_18 [0] : vector<8x128xf32> to vector<128xf32>
    %37 = vector.shape_cast %36 : vector<128xf32> to vector<1x128xf32>
    %38 = arith.mulf %35, %35 : vector<8x128xf32>
    %cst_19 = arith.constant dense<0.000000e+00> : vector<128xf32>
    %39 = vector.multi_reduction <add>, %38, %cst_19 [0] : vector<8x128xf32> to vector<128xf32>
    %40 = vector.shape_cast %39 : vector<128xf32> to vector<1x128xf32>
    %cst_20 = arith.constant 1.250000e-01 : f32
    %41 = vector.broadcast %cst_20 : f32 to vector<1x128xf32>
    %42 = arith.mulf %37, %41 : vector<1x128xf32>
    %cst_21 = arith.constant 1.250000e-01 : f32
    %43 = vector.broadcast %cst_21 : f32 to vector<1x128xf32>
    %44 = arith.mulf %40, %43 : vector<1x128xf32>
    %45 = arith.mulf %42, %42 : vector<1x128xf32>
    %46 = arith.subf %44, %45 : vector<1x128xf32>
    %cst_22 = arith.constant 0.000000e+00 : f32
    %47 = vector.broadcast %cst_22 : f32 to vector<1x128xf32>
    %48 = arith.maximumf %46, %47 : vector<1x128xf32>
    %cst_23 = arith.constant 9.99999974E-6 : f32
    %49 = vector.broadcast %cst_23 : f32 to vector<1x128xf32>
    %50 = arith.addf %48, %49 : vector<1x128xf32>
    %51 = math.rsqrt %50 : vector<1x128xf32>
    %52 = arith.mulf %4, %51 : vector<1x128xf32>
    %53 = arith.mulf %42, %52 : vector<1x128xf32>
    %54 = arith.subf %5, %53 : vector<1x128xf32>
    %55 = vector.broadcast %52 : vector<1x128xf32> to vector<8x128xf32>
    %56 = arith.mulf %35, %55 : vector<8x128xf32>
    %57 = vector.broadcast %54 : vector<1x128xf32> to vector<8x128xf32>
    %58 = arith.addf %56, %57 : vector<8x128xf32>
    %cst_24 = arith.constant 0.000000e+00 : f32
    %59 = vector.broadcast %cst_24 : f32 to vector<8x128xf32>
    %60 = arith.maximumf %58, %59 : vector<8x128xf32>
    %cst_25 = arith.constant dense<0.000000e+00> : vector<8x128xf32>
    %61 = tpu.matmul %60, %8, %cst_25 {dimension_numbers = #tpu.dot_dimension_numbers<[1], [0], [0], [1], [0, 0, 1, 1], [], []>} : vector<8x128xf32>, vector<128x128xf32>, vector<8x128xf32> -> vector<8x128xf32>
    %cst_26 = arith.constant dense<0.000000e+00> : vector<8x128xf32>
    %62 = tpu.matmul %1, %9, %cst_26 {dimension_numbers = #tpu.dot_dimension_numbers<[1], [0], [0], [1], [0, 0, 1, 1], [], []>} : vector<8x128xf32>, vector<128x128xf32>, vector<8x128xf32> -> vector<8x128xf32>
    %63 = arith.addf %61, %62 : vector<8x128xf32>
    %64 = vector.broadcast %6 : vector<1x128xf32> to vector<8x128xf32>
    %65 = arith.addf %63, %64 : vector<8x128xf32>
    %cst_27 = arith.constant 0.000000e+00 : f32
    %66 = vector.broadcast %cst_27 : f32 to vector<8x128xf32>
    %67 = arith.maximumf %65, %66 : vector<8x128xf32>
    %c392 = arith.constant 392 : index
    %c0_28 = arith.constant 0 : index
    %68 = vector.load %arg2[%c392, %c0_28] : memref<1704x128xf32, #tpu.memory_space<vmem>>, vector<1x128xf32>
    %c393 = arith.constant 393 : index
    %c0_29 = arith.constant 0 : index
    %69 = vector.load %arg2[%c393, %c0_29] : memref<1704x128xf32, #tpu.memory_space<vmem>>, vector<1x128xf32>
    %c394 = arith.constant 394 : index
    %c0_30 = arith.constant 0 : index
    %70 = vector.load %arg2[%c394, %c0_30] : memref<1704x128xf32, #tpu.memory_space<vmem>>, vector<1x128xf32>
    %c395 = arith.constant 395 : index
    %c0_31 = arith.constant 0 : index
    %71 = vector.load %arg2[%c395, %c0_31] : memref<1704x128xf32, #tpu.memory_space<vmem>>, vector<1x128xf32>
    %c396 = arith.constant 396 : index
    %c0_32 = arith.constant 0 : index
    %72 = vector.load %arg2[%c396, %c0_32] : memref<1704x128xf32, #tpu.memory_space<vmem>>, vector<1x128xf32>
    %c400 = arith.constant 400 : index
    %c0_33 = arith.constant 0 : index
    %73 = vector.load %arg2[%c400, %c0_33] : memref<1704x128xf32, #tpu.memory_space<vmem>>, vector<128x128xf32>
    %c528 = arith.constant 528 : index
    %c0_34 = arith.constant 0 : index
    %74 = vector.load %arg2[%c528, %c0_34] : memref<1704x128xf32, #tpu.memory_space<vmem>>, vector<128x128xf32>
    %c656 = arith.constant 656 : index
    %c0_35 = arith.constant 0 : index
    %75 = vector.load %arg2[%c656, %c0_35] : memref<1704x128xf32, #tpu.memory_space<vmem>>, vector<128x128xf32>
    %cst_36 = arith.constant dense<0.000000e+00> : vector<128xf32>
    %76 = vector.multi_reduction <add>, %67, %cst_36 [0] : vector<8x128xf32> to vector<128xf32>
    %77 = vector.shape_cast %76 : vector<128xf32> to vector<1x128xf32>
    %78 = arith.mulf %67, %67 : vector<8x128xf32>
    %cst_37 = arith.constant dense<0.000000e+00> : vector<128xf32>
    %79 = vector.multi_reduction <add>, %78, %cst_37 [0] : vector<8x128xf32> to vector<128xf32>
    %80 = vector.shape_cast %79 : vector<128xf32> to vector<1x128xf32>
    %cst_38 = arith.constant 1.250000e-01 : f32
    %81 = vector.broadcast %cst_38 : f32 to vector<1x128xf32>
    %82 = arith.mulf %77, %81 : vector<1x128xf32>
    %cst_39 = arith.constant 1.250000e-01 : f32
    %83 = vector.broadcast %cst_39 : f32 to vector<1x128xf32>
    %84 = arith.mulf %80, %83 : vector<1x128xf32>
    %85 = arith.mulf %82, %82 : vector<1x128xf32>
    %86 = arith.subf %84, %85 : vector<1x128xf32>
    %cst_40 = arith.constant 0.000000e+00 : f32
    %87 = vector.broadcast %cst_40 : f32 to vector<1x128xf32>
    %88 = arith.maximumf %86, %87 : vector<1x128xf32>
    %cst_41 = arith.constant 9.99999974E-6 : f32
    %89 = vector.broadcast %cst_41 : f32 to vector<1x128xf32>
    %90 = arith.addf %88, %89 : vector<1x128xf32>
    %91 = math.rsqrt %90 : vector<1x128xf32>
    %92 = arith.mulf %68, %91 : vector<1x128xf32>
    %93 = arith.mulf %82, %92 : vector<1x128xf32>
    %94 = arith.subf %69, %93 : vector<1x128xf32>
    %95 = vector.broadcast %92 : vector<1x128xf32> to vector<8x128xf32>
    %96 = arith.mulf %67, %95 : vector<8x128xf32>
    %97 = vector.broadcast %94 : vector<1x128xf32> to vector<8x128xf32>
    %98 = arith.addf %96, %97 : vector<8x128xf32>
    %cst_42 = arith.constant 0.000000e+00 : f32
    %99 = vector.broadcast %cst_42 : f32 to vector<8x128xf32>
    %100 = arith.maximumf %98, %99 : vector<8x128xf32>
    %cst_43 = arith.constant dense<0.000000e+00> : vector<8x128xf32>
    %101 = tpu.matmul %100, %73, %cst_43 {dimension_numbers = #tpu.dot_dimension_numbers<[1], [0], [0], [1], [0, 0, 1, 1], [], []>} : vector<8x128xf32>, vector<128x128xf32>, vector<8x128xf32> -> vector<8x128xf32>
    %cst_44 = arith.constant dense<0.000000e+00> : vector<128xf32>
    %102 = vector.multi_reduction <add>, %101, %cst_44 [0] : vector<8x128xf32> to vector<128xf32>
    %103 = vector.shape_cast %102 : vector<128xf32> to vector<1x128xf32>
    %104 = arith.mulf %101, %101 : vector<8x128xf32>
    %cst_45 = arith.constant dense<0.000000e+00> : vector<128xf32>
    %105 = vector.multi_reduction <add>, %104, %cst_45 [0] : vector<8x128xf32> to vector<128xf32>
    %106 = vector.shape_cast %105 : vector<128xf32> to vector<1x128xf32>
    %cst_46 = arith.constant 1.250000e-01 : f32
    %107 = vector.broadcast %cst_46 : f32 to vector<1x128xf32>
    %108 = arith.mulf %103, %107 : vector<1x128xf32>
    %cst_47 = arith.constant 1.250000e-01 : f32
    %109 = vector.broadcast %cst_47 : f32 to vector<1x128xf32>
    %110 = arith.mulf %106, %109 : vector<1x128xf32>
    %111 = arith.mulf %108, %108 : vector<1x128xf32>
    %112 = arith.subf %110, %111 : vector<1x128xf32>
    %cst_48 = arith.constant 0.000000e+00 : f32
    %113 = vector.broadcast %cst_48 : f32 to vector<1x128xf32>
    %114 = arith.maximumf %112, %113 : vector<1x128xf32>
    %cst_49 = arith.constant 9.99999974E-6 : f32
    %115 = vector.broadcast %cst_49 : f32 to vector<1x128xf32>
    %116 = arith.addf %114, %115 : vector<1x128xf32>
    %117 = math.rsqrt %116 : vector<1x128xf32>
    %118 = arith.mulf %70, %117 : vector<1x128xf32>
    %119 = arith.mulf %108, %118 : vector<1x128xf32>
    %120 = arith.subf %71, %119 : vector<1x128xf32>
    %121 = vector.broadcast %118 : vector<1x128xf32> to vector<8x128xf32>
    %122 = arith.mulf %101, %121 : vector<8x128xf32>
    %123 = vector.broadcast %120 : vector<1x128xf32> to vector<8x128xf32>
    %124 = arith.addf %122, %123 : vector<8x128xf32>
    %cst_50 = arith.constant 0.000000e+00 : f32
    %125 = vector.broadcast %cst_50 : f32 to vector<8x128xf32>
    %126 = arith.maximumf %124, %125 : vector<8x128xf32>
    %cst_51 = arith.constant dense<0.000000e+00> : vector<8x128xf32>
    %127 = tpu.matmul %126, %74, %cst_51 {dimension_numbers = #tpu.dot_dimension_numbers<[1], [0], [0], [1], [0, 0, 1, 1], [], []>} : vector<8x128xf32>, vector<128x128xf32>, vector<8x128xf32> -> vector<8x128xf32>
    %cst_52 = arith.constant dense<0.000000e+00> : vector<8x128xf32>
    %128 = tpu.matmul %67, %75, %cst_52 {dimension_numbers = #tpu.dot_dimension_numbers<[1], [0], [0], [1], [0, 0, 1, 1], [], []>} : vector<8x128xf32>, vector<128x128xf32>, vector<8x128xf32> -> vector<8x128xf32>
    %129 = arith.addf %127, %128 : vector<8x128xf32>
    %130 = vector.broadcast %72 : vector<1x128xf32> to vector<8x128xf32>
    %131 = arith.addf %129, %130 : vector<8x128xf32>
    %cst_53 = arith.constant 0.000000e+00 : f32
    %132 = vector.broadcast %cst_53 : f32 to vector<8x128xf32>
    %133 = arith.maximumf %131, %132 : vector<8x128xf32>
    %c784 = arith.constant 784 : index
    %c0_54 = arith.constant 0 : index
    %134 = vector.load %arg2[%c784, %c0_54] : memref<1704x128xf32, #tpu.memory_space<vmem>>, vector<1x128xf32>
    %c785 = arith.constant 785 : index
    %c0_55 = arith.constant 0 : index
    %135 = vector.load %arg2[%c785, %c0_55] : memref<1704x128xf32, #tpu.memory_space<vmem>>, vector<1x128xf32>
    %c786 = arith.constant 786 : index
    %c0_56 = arith.constant 0 : index
    %136 = vector.load %arg2[%c786, %c0_56] : memref<1704x128xf32, #tpu.memory_space<vmem>>, vector<1x128xf32>
    %c787 = arith.constant 787 : index
    %c0_57 = arith.constant 0 : index
    %137 = vector.load %arg2[%c787, %c0_57] : memref<1704x128xf32, #tpu.memory_space<vmem>>, vector<1x128xf32>
    %c788 = arith.constant 788 : index
    %c0_58 = arith.constant 0 : index
    %138 = vector.load %arg2[%c788, %c0_58] : memref<1704x128xf32, #tpu.memory_space<vmem>>, vector<1x128xf32>
    %c792 = arith.constant 792 : index
    %c0_59 = arith.constant 0 : index
    %139 = vector.load %arg2[%c792, %c0_59] : memref<1704x128xf32, #tpu.memory_space<vmem>>, vector<128x128xf32>
    %c920 = arith.constant 920 : index
    %c0_60 = arith.constant 0 : index
    %140 = vector.load %arg2[%c920, %c0_60] : memref<1704x128xf32, #tpu.memory_space<vmem>>, vector<128x128xf32>
    %c1048 = arith.constant 1048 : index
    %c0_61 = arith.constant 0 : index
    %141 = vector.load %arg2[%c1048, %c0_61] : memref<1704x128xf32, #tpu.memory_space<vmem>>, vector<128x128xf32>
    %cst_62 = arith.constant dense<0.000000e+00> : vector<128xf32>
    %142 = vector.multi_reduction <add>, %133, %cst_62 [0] : vector<8x128xf32> to vector<128xf32>
    %143 = vector.shape_cast %142 : vector<128xf32> to vector<1x128xf32>
    %144 = arith.mulf %133, %133 : vector<8x128xf32>
    %cst_63 = arith.constant dense<0.000000e+00> : vector<128xf32>
    %145 = vector.multi_reduction <add>, %144, %cst_63 [0] : vector<8x128xf32> to vector<128xf32>
    %146 = vector.shape_cast %145 : vector<128xf32> to vector<1x128xf32>
    %cst_64 = arith.constant 1.250000e-01 : f32
    %147 = vector.broadcast %cst_64 : f32 to vector<1x128xf32>
    %148 = arith.mulf %143, %147 : vector<1x128xf32>
    %cst_65 = arith.constant 1.250000e-01 : f32
    %149 = vector.broadcast %cst_65 : f32 to vector<1x128xf32>
    %150 = arith.mulf %146, %149 : vector<1x128xf32>
    %151 = arith.mulf %148, %148 : vector<1x128xf32>
    %152 = arith.subf %150, %151 : vector<1x128xf32>
    %cst_66 = arith.constant 0.000000e+00 : f32
    %153 = vector.broadcast %cst_66 : f32 to vector<1x128xf32>
    %154 = arith.maximumf %152, %153 : vector<1x128xf32>
    %cst_67 = arith.constant 9.99999974E-6 : f32
    %155 = vector.broadcast %cst_67 : f32 to vector<1x128xf32>
    %156 = arith.addf %154, %155 : vector<1x128xf32>
    %157 = math.rsqrt %156 : vector<1x128xf32>
    %158 = arith.mulf %134, %157 : vector<1x128xf32>
    %159 = arith.mulf %148, %158 : vector<1x128xf32>
    %160 = arith.subf %135, %159 : vector<1x128xf32>
    %161 = vector.broadcast %158 : vector<1x128xf32> to vector<8x128xf32>
    %162 = arith.mulf %133, %161 : vector<8x128xf32>
    %163 = vector.broadcast %160 : vector<1x128xf32> to vector<8x128xf32>
    %164 = arith.addf %162, %163 : vector<8x128xf32>
    %cst_68 = arith.constant 0.000000e+00 : f32
    %165 = vector.broadcast %cst_68 : f32 to vector<8x128xf32>
    %166 = arith.maximumf %164, %165 : vector<8x128xf32>
    %cst_69 = arith.constant dense<0.000000e+00> : vector<8x128xf32>
    %167 = tpu.matmul %166, %139, %cst_69 {dimension_numbers = #tpu.dot_dimension_numbers<[1], [0], [0], [1], [0, 0, 1, 1], [], []>} : vector<8x128xf32>, vector<128x128xf32>, vector<8x128xf32> -> vector<8x128xf32>
    %cst_70 = arith.constant dense<0.000000e+00> : vector<128xf32>
    %168 = vector.multi_reduction <add>, %167, %cst_70 [0] : vector<8x128xf32> to vector<128xf32>
    %169 = vector.shape_cast %168 : vector<128xf32> to vector<1x128xf32>
    %170 = arith.mulf %167, %167 : vector<8x128xf32>
    %cst_71 = arith.constant dense<0.000000e+00> : vector<128xf32>
    %171 = vector.multi_reduction <add>, %170, %cst_71 [0] : vector<8x128xf32> to vector<128xf32>
    %172 = vector.shape_cast %171 : vector<128xf32> to vector<1x128xf32>
    %cst_72 = arith.constant 1.250000e-01 : f32
    %173 = vector.broadcast %cst_72 : f32 to vector<1x128xf32>
    %174 = arith.mulf %169, %173 : vector<1x128xf32>
    %cst_73 = arith.constant 1.250000e-01 : f32
    %175 = vector.broadcast %cst_73 : f32 to vector<1x128xf32>
    %176 = arith.mulf %172, %175 : vector<1x128xf32>
    %177 = arith.mulf %174, %174 : vector<1x128xf32>
    %178 = arith.subf %176, %177 : vector<1x128xf32>
    %cst_74 = arith.constant 0.000000e+00 : f32
    %179 = vector.broadcast %cst_74 : f32 to vector<1x128xf32>
    %180 = arith.maximumf %178, %179 : vector<1x128xf32>
    %cst_75 = arith.constant 9.99999974E-6 : f32
    %181 = vector.broadcast %cst_75 : f32 to vector<1x128xf32>
    %182 = arith.addf %180, %181 : vector<1x128xf32>
    %183 = math.rsqrt %182 : vector<1x128xf32>
    %184 = arith.mulf %136, %183 : vector<1x128xf32>
    %185 = arith.mulf %174, %184 : vector<1x128xf32>
    %186 = arith.subf %137, %185 : vector<1x128xf32>
    %187 = vector.broadcast %184 : vector<1x128xf32> to vector<8x128xf32>
    %188 = arith.mulf %167, %187 : vector<8x128xf32>
    %189 = vector.broadcast %186 : vector<1x128xf32> to vector<8x128xf32>
    %190 = arith.addf %188, %189 : vector<8x128xf32>
    %cst_76 = arith.constant 0.000000e+00 : f32
    %191 = vector.broadcast %cst_76 : f32 to vector<8x128xf32>
    %192 = arith.maximumf %190, %191 : vector<8x128xf32>
    %cst_77 = arith.constant dense<0.000000e+00> : vector<8x128xf32>
    %193 = tpu.matmul %192, %140, %cst_77 {dimension_numbers = #tpu.dot_dimension_numbers<[1], [0], [0], [1], [0, 0, 1, 1], [], []>} : vector<8x128xf32>, vector<128x128xf32>, vector<8x128xf32> -> vector<8x128xf32>
    %cst_78 = arith.constant dense<0.000000e+00> : vector<8x128xf32>
    %194 = tpu.matmul %133, %141, %cst_78 {dimension_numbers = #tpu.dot_dimension_numbers<[1], [0], [0], [1], [0, 0, 1, 1], [], []>} : vector<8x128xf32>, vector<128x128xf32>, vector<8x128xf32> -> vector<8x128xf32>
    %195 = arith.addf %193, %194 : vector<8x128xf32>
    %196 = vector.broadcast %138 : vector<1x128xf32> to vector<8x128xf32>
    %197 = arith.addf %195, %196 : vector<8x128xf32>
    %cst_79 = arith.constant 0.000000e+00 : f32
    %198 = vector.broadcast %cst_79 : f32 to vector<8x128xf32>
    %199 = arith.maximumf %197, %198 : vector<8x128xf32>
    %c1176 = arith.constant 1176 : index
    %c0_80 = arith.constant 0 : index
    %200 = vector.load %arg2[%c1176, %c0_80] : memref<1704x128xf32, #tpu.memory_space<vmem>>, vector<1x128xf32>
    %c1177 = arith.constant 1177 : index
    %c0_81 = arith.constant 0 : index
    %201 = vector.load %arg2[%c1177, %c0_81] : memref<1704x128xf32, #tpu.memory_space<vmem>>, vector<1x128xf32>
    %c1178 = arith.constant 1178 : index
    %c0_82 = arith.constant 0 : index
    %202 = vector.load %arg2[%c1178, %c0_82] : memref<1704x128xf32, #tpu.memory_space<vmem>>, vector<1x128xf32>
    %c1179 = arith.constant 1179 : index
    %c0_83 = arith.constant 0 : index
    %203 = vector.load %arg2[%c1179, %c0_83] : memref<1704x128xf32, #tpu.memory_space<vmem>>, vector<1x128xf32>
    %c1180 = arith.constant 1180 : index
    %c0_84 = arith.constant 0 : index
    %204 = vector.load %arg2[%c1180, %c0_84] : memref<1704x128xf32, #tpu.memory_space<vmem>>, vector<1x128xf32>
    %c1184 = arith.constant 1184 : index
    %c0_85 = arith.constant 0 : index
    %205 = vector.load %arg2[%c1184, %c0_85] : memref<1704x128xf32, #tpu.memory_space<vmem>>, vector<128x128xf32>
    %c1312 = arith.constant 1312 : index
    %c0_86 = arith.constant 0 : index
    %206 = vector.load %arg2[%c1312, %c0_86] : memref<1704x128xf32, #tpu.memory_space<vmem>>, vector<128x128xf32>
    %c1440 = arith.constant 1440 : index
    %c0_87 = arith.constant 0 : index
    %207 = vector.load %arg2[%c1440, %c0_87] : memref<1704x128xf32, #tpu.memory_space<vmem>>, vector<128x128xf32>
    %cst_88 = arith.constant dense<0.000000e+00> : vector<128xf32>
    %208 = vector.multi_reduction <add>, %199, %cst_88 [0] : vector<8x128xf32> to vector<128xf32>
    %209 = vector.shape_cast %208 : vector<128xf32> to vector<1x128xf32>
    %210 = arith.mulf %199, %199 : vector<8x128xf32>
    %cst_89 = arith.constant dense<0.000000e+00> : vector<128xf32>
    %211 = vector.multi_reduction <add>, %210, %cst_89 [0] : vector<8x128xf32> to vector<128xf32>
    %212 = vector.shape_cast %211 : vector<128xf32> to vector<1x128xf32>
    %cst_90 = arith.constant 1.250000e-01 : f32
    %213 = vector.broadcast %cst_90 : f32 to vector<1x128xf32>
    %214 = arith.mulf %209, %213 : vector<1x128xf32>
    %cst_91 = arith.constant 1.250000e-01 : f32
    %215 = vector.broadcast %cst_91 : f32 to vector<1x128xf32>
    %216 = arith.mulf %212, %215 : vector<1x128xf32>
    %217 = arith.mulf %214, %214 : vector<1x128xf32>
    %218 = arith.subf %216, %217 : vector<1x128xf32>
    %cst_92 = arith.constant 0.000000e+00 : f32
    %219 = vector.broadcast %cst_92 : f32 to vector<1x128xf32>
    %220 = arith.maximumf %218, %219 : vector<1x128xf32>
    %cst_93 = arith.constant 9.99999974E-6 : f32
    %221 = vector.broadcast %cst_93 : f32 to vector<1x128xf32>
    %222 = arith.addf %220, %221 : vector<1x128xf32>
    %223 = math.rsqrt %222 : vector<1x128xf32>
    %224 = arith.mulf %200, %223 : vector<1x128xf32>
    %225 = arith.mulf %214, %224 : vector<1x128xf32>
    %226 = arith.subf %201, %225 : vector<1x128xf32>
    %227 = vector.broadcast %224 : vector<1x128xf32> to vector<8x128xf32>
    %228 = arith.mulf %199, %227 : vector<8x128xf32>
    %229 = vector.broadcast %226 : vector<1x128xf32> to vector<8x128xf32>
    %230 = arith.addf %228, %229 : vector<8x128xf32>
    %cst_94 = arith.constant 0.000000e+00 : f32
    %231 = vector.broadcast %cst_94 : f32 to vector<8x128xf32>
    %232 = arith.maximumf %230, %231 : vector<8x128xf32>
    %cst_95 = arith.constant dense<0.000000e+00> : vector<8x128xf32>
    %233 = tpu.matmul %232, %205, %cst_95 {dimension_numbers = #tpu.dot_dimension_numbers<[1], [0], [0], [1], [0, 0, 1, 1], [], []>} : vector<8x128xf32>, vector<128x128xf32>, vector<8x128xf32> -> vector<8x128xf32>
    %cst_96 = arith.constant dense<0.000000e+00> : vector<128xf32>
    %234 = vector.multi_reduction <add>, %233, %cst_96 [0] : vector<8x128xf32> to vector<128xf32>
    %235 = vector.shape_cast %234 : vector<128xf32> to vector<1x128xf32>
    %236 = arith.mulf %233, %233 : vector<8x128xf32>
    %cst_97 = arith.constant dense<0.000000e+00> : vector<128xf32>
    %237 = vector.multi_reduction <add>, %236, %cst_97 [0] : vector<8x128xf32> to vector<128xf32>
    %238 = vector.shape_cast %237 : vector<128xf32> to vector<1x128xf32>
    %cst_98 = arith.constant 1.250000e-01 : f32
    %239 = vector.broadcast %cst_98 : f32 to vector<1x128xf32>
    %240 = arith.mulf %235, %239 : vector<1x128xf32>
    %cst_99 = arith.constant 1.250000e-01 : f32
    %241 = vector.broadcast %cst_99 : f32 to vector<1x128xf32>
    %242 = arith.mulf %238, %241 : vector<1x128xf32>
    %243 = arith.mulf %240, %240 : vector<1x128xf32>
    %244 = arith.subf %242, %243 : vector<1x128xf32>
    %cst_100 = arith.constant 0.000000e+00 : f32
    %245 = vector.broadcast %cst_100 : f32 to vector<1x128xf32>
    %246 = arith.maximumf %244, %245 : vector<1x128xf32>
    %cst_101 = arith.constant 9.99999974E-6 : f32
    %247 = vector.broadcast %cst_101 : f32 to vector<1x128xf32>
    %248 = arith.addf %246, %247 : vector<1x128xf32>
    %249 = math.rsqrt %248 : vector<1x128xf32>
    %250 = arith.mulf %202, %249 : vector<1x128xf32>
    %251 = arith.mulf %240, %250 : vector<1x128xf32>
    %252 = arith.subf %203, %251 : vector<1x128xf32>
    %253 = vector.broadcast %250 : vector<1x128xf32> to vector<8x128xf32>
    %254 = arith.mulf %233, %253 : vector<8x128xf32>
    %255 = vector.broadcast %252 : vector<1x128xf32> to vector<8x128xf32>
    %256 = arith.addf %254, %255 : vector<8x128xf32>
    %cst_102 = arith.constant 0.000000e+00 : f32
    %257 = vector.broadcast %cst_102 : f32 to vector<8x128xf32>
    %258 = arith.maximumf %256, %257 : vector<8x128xf32>
    %cst_103 = arith.constant dense<0.000000e+00> : vector<8x128xf32>
    %259 = tpu.matmul %258, %206, %cst_103 {dimension_numbers = #tpu.dot_dimension_numbers<[1], [0], [0], [1], [0, 0, 1, 1], [], []>} : vector<8x128xf32>, vector<128x128xf32>, vector<8x128xf32> -> vector<8x128xf32>
    %cst_104 = arith.constant dense<0.000000e+00> : vector<8x128xf32>
    %260 = tpu.matmul %199, %207, %cst_104 {dimension_numbers = #tpu.dot_dimension_numbers<[1], [0], [0], [1], [0, 0, 1, 1], [], []>} : vector<8x128xf32>, vector<128x128xf32>, vector<8x128xf32> -> vector<8x128xf32>
    %261 = arith.addf %259, %260 : vector<8x128xf32>
    %262 = vector.broadcast %204 : vector<1x128xf32> to vector<8x128xf32>
    %263 = arith.addf %261, %262 : vector<8x128xf32>
    %cst_105 = arith.constant 0.000000e+00 : f32
    %264 = vector.broadcast %cst_105 : f32 to vector<8x128xf32>
    %265 = arith.maximumf %263, %264 : vector<8x128xf32>
    %c1568 = arith.constant 1568 : index
    %c0_106 = arith.constant 0 : index
    %266 = vector.load %arg2[%c1568, %c0_106] : memref<1704x128xf32, #tpu.memory_space<vmem>>, vector<128x128xf32>
    %c1696 = arith.constant 1696 : index
    %c0_107 = arith.constant 0 : index
    %267 = vector.load %arg2[%c1696, %c0_107] : memref<1704x128xf32, #tpu.memory_space<vmem>>, vector<1x128xf32>
    %cst_108 = arith.constant dense<0.000000e+00> : vector<8x128xf32>
    %268 = tpu.matmul %265, %266, %cst_108 {dimension_numbers = #tpu.dot_dimension_numbers<[1], [0], [0], [1], [0, 0, 1, 1], [], []>} : vector<8x128xf32>, vector<128x128xf32>, vector<8x128xf32> -> vector<8x128xf32>
    %269 = vector.broadcast %267 : vector<1x128xf32> to vector<8x128xf32>
    %270 = arith.addf %268, %269 : vector<8x128xf32>
    %c0_109 = arith.constant 0 : index
    %c0_110 = arith.constant 0 : index
    %c0_111 = arith.constant 0 : index
    %271 = vector.load %arg3[%c0_109, %c0_110, %c0_111] : memref<1x8x128xf32, #tpu.memory_space<vmem>>, vector<1x8x128xf32>
    %272 = vector.shape_cast %271 : vector<1x8x128xf32> to vector<8x128xf32>
    %273 = vector.shape_cast %270 : vector<8x128xf32> to vector<1x8x128xf32>
    tpu.vector_store %arg3[%c0_109, %c0_110, %c0_111], %273 {strides = array<i32>} : memref<1x8x128xf32, #tpu.memory_space<vmem>>, vector<1x8x128xf32>,
    return
  }
  func.func @transform_0(%arg0: i32) -> (i32, i32, i32) {
    %c0_i32 = arith.constant 0 : i32
    %c0_i32_0 = arith.constant 0 : i32
    %c0_i32_1 = arith.constant 0 : i32
    return %arg0, %c0_i32, %c0_i32_0 : i32, i32, i32
  }
  func.func @transform_1(%arg0: i32) -> (i32, i32) {
    %c0_i32 = arith.constant 0 : i32
    %c0_i32_0 = arith.constant 0 : i32
    %c0_i32_1 = arith.constant 0 : i32
    return %c0_i32, %c0_i32_0 : i32, i32
  }
  func.func @transform_2(%arg0: i32) -> (i32, i32, i32) {
    %c0_i32 = arith.constant 0 : i32
    %c0_i32_0 = arith.constant 0 : i32
    %c0_i32_1 = arith.constant 0 : i32
    return %arg0, %c0_i32, %c0_i32_0 : i32, i32, i32
  }
}

</mosaic_0001>

<bundles_post_ra>
// kernel: small_residual_network.1
= control target key start
LH: loop header
LB: loop body
LE: loop exit
PB: predicated region body
PF: predicated region fallthrough
CT: control target
= control target key end

     0   :  { %7 = vsyncpa [#allocation3], 0  ;;  %s2765_s9 = smov 0   ;;  %s2990_s0 = inlined_call_operand.vmem [shape: f32[4,8,128], index: 0, kind: input, shape index: {}]   ;;  %s2991_s1 = inlined_call_operand.hbm [shape: f32[1704,128], index: 1, kind: input, shape index: {}]   ;;  %s2992_s2 = inlined_call_operand.vmem [shape: f32[4,8,128], index: 2, kind: output, shape index: {}]  }
   0x1 LB: > { %s2771_s10 = sadd.s32 4294967295, %s2742_s9   ;;  %p1662_p0 = scmp.ge.s32.totalorder %s2742_s9, 1  ;;  %s2742_s9 = sphi %s2765_s9, %s13_s9  }
   0x2   : > { %p91_p1 = scmp.lt.s32.totalorder %s2742_s9, 5  ;;  %s2744_s11 = smov [#allocation2]  }
   0x3   : > { %s103_s12 = sshll.u32 %s2744_s11, 4  ;;  %p2993_p3 = scmp.eq.s32.totalorder %s2771_s10, 0  ;;  %s104_s12 = int_to_ptr.vmem [resolvable:$true] %s103_s12 }
   0x4   : > { %p2775_p2 = pnand %p1662_p0, %p91_p1  ;;  %s2704_s17 = scalar_lea.hbm %s2991_s1, 27264 }
   0x5   : > { %p2705_p6 = scmp.ne.s32.totalorder %s2991_s1, %s2704_s17  ;;  %p2711_p10 = scmp.lt.u32.totalorder %s2704_s17, %s2991_s1 }
   0x6   : > { %s2995_s13 = scalar_select %p2775_p2, 1, 0 }
   0x7   : > { %p2668_p4 = pneg %p2775_p2 }
   0x9   : > { %p2784_p5 = pnand %p2993_p3, %p2668_p4 }
   0xb   : > { %p2706_p7 = pneg %p2784_p5 }
   0xd   : > { %p2707_p8 = pnand %p2706_p7, %p2705_p6 }
   0xf   : > { %p2708_p9 = pneg %p2707_p8 }
  0x11   : > { %p2713_p11 = pnand %p2711_p10, %p2708_p9 }
  0x13   : > { %2716 = shalt.err (!%p2713_p11)
}
  0x14   : > { %s2717_s22 = scalar_lea.vmem %s104_s12, 27264  ;;  %p2725_p1 = scmp.lt.s32.totalorder %s104_s12, %s104_s12 }
  0x15   : > { %p2718_p12 = scmp.ne.s32.totalorder %s104_s12, %s2717_s22  ;;  %p2726_p4 = scmp.lt.s32.totalorder %s2717_s22, %s2717_s22 }
  0x17   : > { %p2720_p13 = pnand %p2718_p12, %p2706_p7  ;;  %p2727_p3 = por %p2726_p4, %p2725_p1 }
  0x19   : > { %p2721_p0 = pneg %p2720_p13 }
  0x1b   : > { %p2728_p2 = pnand %p2727_p3, %p2721_p0 }
  0x1d   : > { %2731 = shalt.err (!%p2728_p2)
}
  0x1e   : > { %s2745_s23 = smov 128   ;;  %s2746_s24 = smov 8  }
  0x1f   : > { %2671 = dma.hbm_to_vmem [thread:$0]  (!%p2784_p5), %s2991_s1, 27264, %s104_s12, [#allocation3], %s2745_s23, %s2745_s23, %s2746_s24  }
  0x20   : > { %p2997_p6 = scmp.ne.s32.totalorder %s2995_s13, 0 }
  0x21   : > { %p2998_p8 = scmp.eq.s32.totalorder (!%p2997_p6), %s2771_s10, 0 }
  0x22   : > { %126 = sbr.rel (%p2997_p6) target bundleno = 2343 (0x927), region = 28 }
  0x29   : > { %2737 = dma.done.wait (%p2998_p8), [#allocation3], 27264   ;;  %p2999_p7 = pmov %p2998_p8 }
  0x2a   : > { %p146_p2 = scmp.lt.s32.totalorder %s2771_s10, 3  ;;  %v2747_v0 = vmov 0.0|0.0   ;;  %vm2748_vm0 = vmmov 0   ;;  %v2749_v1 = vmov 0.0   ;;  %v160_v2 = vld [vmem:[#allocation2 + $0x8] sm:$0xff]  ;;  %v161_v3 = vld [vmem:[#allocation2 + $0x10] sm:$0xff]  ;;  %v231_v46 = vlaneseq }
  0x2b   : > { %2739 = vsyncadd (%p2999_p7), [#allocation3], 4294940032  ;;  %2352 = vmatprep.subr.bf16.mxu0 %v2747_v0  ;;  %1929 = vmatprep.mubr.msk.f32.mxu0 %vm2748_vm0, %v2749_v1  ;;  %v162_v4 = vld [vmem:[#allocation2 + $0x18] sm:$0xff]  ;;  %v2353_v5 = vpack.c.bf16 %v161_v3, %v160_v2  ;;  %v163_v6 = vld [vmem:[#allocation2 + $0x20] sm:$0xff] }
  0x2c   : > { %s3001_s10 = smov (!%p146_p2, %s2771_s10), 3  ;;  %2376 = vmatprep.subr.bf16.mxu1 %v2747_v0  ;;  %1964 = vmatprep.mubr.msk.f32.mxu1 %vm2748_vm0, %v2749_v1  ;;  %v2356_v7 = vpack.c.bf16 %v163_v6, %v162_v4  ;;  %v164_v8 = vld [vmem:[#allocation2 + $0x28] sm:$0xff]  ;;  %v165_v9 = vld [vmem:[#allocation2 + $0x30] sm:$0xff]  ;;  %v166_v14 = vld [vmem:[#allocation2 + $0x38] sm:$0xff]  ;;  %v232_v47 = vshrl.u32 %v231_v46, 7 }
  0x2d   : > { %s1667_s27 = sshll.u32 %s3001_s10, 3  ;;  %2354 = vmatpush3.bf16.msra.mxu0 %v2353_v5  ;;  %v2359_v13 = vpack.c.bf16 %v165_v9, %v164_v8  ;;  %v167_v15 = vld [vmem:[#allocation2 + $0x40] sm:$0xff]  ;;  %v168_v21 = vld [vmem:[#allocation2 + $0x48] sm:$0xff]  ;;  %v169_v22 = vld [vmem:[#allocation2 + $0x50] sm:$0xff] }
  0x2e   : > { %s149_s30 = scalar_lea.vmem %s2990_s0, %s1667_s27  ;;  %2355 = vmatprep.subr.bf16.mxu0 %v2747_v0  ;;  %v2362_v20 = vpack.c.bf16 %v167_v15, %v166_v14  ;;  %v2365_v27 = vpack.c.bf16 %v169_v22, %v168_v21  ;;  %v170_v28 = vld [vmem:[#allocation2 + $0x58] sm:$0xff]  ;;  %v171_v29 = vld [vmem:[#allocation2 + $0x60] sm:$0xff]  ;;  %v172_v35 = vld [vmem:[#allocation2 + $0x68] sm:$0xff]  ;;  %v2840_v49 = vsub.s32 0, %v232_v47  ;;  %s153_s5 = scalar_lea.vmem %s2992_s2, %s1667_s27 }
  0x2f   : > { %v2827_v10 = vld [vmem:[%s149_s30] sm:$0xff]  ;;  %v2368_v34 = vpack.c.bf16 %v171_v29, %v170_v28  ;;  %v173_v36 = vld [vmem:[#allocation2 + $0x70] sm:$0xff]  ;;  %v174_v41 = vld [vmem:[#allocation2 + $0x78] sm:$0xff] }
  0x30   : > { %v208_v11 = vrot.slane %v2827_v10, 4  ;;  %v214_v12 = vmul.f32 %v2827_v10, %v2827_v10  ;;  %v2371_v40 = vpack.c.bf16 %v173_v36, %v172_v35  ;;  %v175_v42 = vld [vmem:[#allocation2 + $0x80] sm:$0xff]  ;;  %v192_v60 = vld [vmem:[#allocation2 + $0x108] sm:$0xff]  ;;  %v193_v61 = vld [vmem:[#allocation2 + $0x110] sm:$0xff] }
  0x31   : > { %2357 = vmatpush3.bf16.msra.mxu0 %v2356_v7  ;;  %v2374_v45 = vpack.c.bf16 %v175_v42, %v174_v41  ;;  %v155_v48 = vld [vmem:[#allocation2] sm:$0x1]  ;;  %v156_v52 = vld [vmem:[#allocation2 + $0x1] sm:$0x1]  ;;  %v2377_v62 = vpack.c.bf16 %v193_v61, %v192_v60  ;;  %v176_v63 = vld [vmem:[#allocation2 + $0x88] sm:$0xff] }
  0x32   : > { %2358 = vmatprep.subr.bf16.mxu0 %v2747_v0  ;;  %v209_v16 = vadd.f32 %v208_v11, %v2827_v10  ;;  %v215_v17 = vrot.slane %v214_v12, 4  ;;  %v177_v2 = vld [vmem:[#allocation2 + $0x90] sm:$0xff]  ;;  %v194_v4 = vld [vmem:[#allocation2 + $0x118] sm:$0xff]  ;;  %v195_v5 = vld [vmem:[#allocation2 + $0x120] sm:$0xff] }
  0x33   : > { %v2401_v3 = vpack.c.bf16 %v177_v2, %v176_v63  ;;  %2378 = vmatpush3.bf16.msra.mxu1 %v2377_v62  ;;  %v2380_v6 = vpack.c.bf16 %v195_v5, %v194_v4  ;;  %v178_v7 = vld [vmem:[#allocation2 + $0x98] sm:$0xff]  ;;  %v179_v8 = vld [vmem:[#allocation2 + $0xa0] sm:$0xff]  ;;  %v196_v11 = vld [vmem:[#allocation2 + $0x128] sm:$0xff] }
  0x34   : > { %v210_v18 = vrot.slane %v209_v16, 2  ;;  %v216_v19 = vadd.f32 %v215_v17, %v214_v12  ;;  %2379 = vmatprep.subr.bf16.mxu1 %v2747_v0  ;;  %v2404_v9 = vpack.c.bf16 %v179_v8, %v178_v7  ;;  %v197_v12 = vld [vmem:[#allocation2 + $0x130] sm:$0xff]  ;;  %v180_v14 = vld [vmem:[#allocation2 + $0xa8] sm:$0xff]  ;;  %v198_v17 = vld [vmem:[#allocation2 + $0x138] sm:$0xff] }
  0x35   : > { %2360 = vmatpush3.bf16.msra.mxu0 %v2359_v13  ;;  %v2383_v13 = vpack.c.bf16 %v197_v12, %v196_v11  ;;  %v181_v15 = vld [vmem:[#allocation2 + $0xb0] sm:$0xff]  ;;  %v183_v21 = vld [vmem:[#allocation2 + $0xc0] sm:$0xff]  ;;  %v202_v29 = vld [vmem:[#allocation2 + $0x158] sm:$0xff] }
  0x36   : > { %2361 = vmatprep.subr.bf16.mxu0 %v2747_v0  ;;  %v211_v23 = vadd.f32 %v210_v18, %v209_v16  ;;  %v217_v24 = vrot.slane %v216_v19, 2  ;;  %v2407_v16 = vpack.c.bf16 %v181_v15, %v180_v14  ;;  %v199_v18 = vld [vmem:[#allocation2 + $0x140] sm:$0xff]  ;;  %v204_v35 = vld [vmem:[#allocation2 + $0x168] sm:$0xff]  ;;  %v205_v36 = vld [vmem:[#allocation2 + $0x170] sm:$0xff] }
  0x37   : > { %2381 = vmatpush3.bf16.msra.mxu1 %v2380_v6  ;;  %v206_v41 = vld [vmem:[#allocation2 + $0x178] sm:$0xff]  ;;  %v207_v42 = vld [vmem:[#allocation2 + $0x180] sm:$0xff] }
  0x38   : > { %v212_v25 = vrot.slane %v211_v23, 1  ;;  %v218_v26 = vadd.f32 %v217_v24, %v216_v19  ;;  %2382 = vmatprep.subr.bf16.mxu1 %v2747_v0  ;;  %v2386_v19 = vpack.c.bf16 %v199_v18, %v198_v17  ;;  %v201_v24 = vld [vmem:[#allocation2 + $0x150] sm:$0xff]  ;;  %v157_v6 = vld [vmem:[#allocation2 + $0x2] sm:$0x1]  ;;  %v530_v17 = vld [vmem:[#allocation2 + $0x298] sm:$0xff] }
  0x39   : > { %2363 = vmatpush3.bf16.msra.mxu0 %v2362_v20  ;;  %v182_v20 = vld [vmem:[#allocation2 + $0xb8] sm:$0xff] }
  0x3a   : > { %2364 = vmatprep.subr.bf16.mxu0 %v2747_v0  ;;  %v213_v30 = vadd.f32 %v212_v25, %v211_v23  ;;  %v219_v31 = vrot.slane %v218_v26, 1  ;;  %v2410_v22 = vpack.c.bf16 %v183_v21, %v182_v20  ;;  %v200_v23 = vld [vmem:[#allocation2 + $0x148] sm:$0xff]  ;;  %v531_v21 = vld [vmem:[#allocation2 + $0x2a0] sm:$0xff] }
  0x3b   : > { %2384 = vmatpush3.bf16.msra.mxu1 %v2383_v13  ;;  %v2389_v25 = vpack.c.bf16 %v201_v24, %v200_v23  ;;  %v533_v24 = vld [vmem:[#allocation2 + $0x2b0] sm:$0xff] }
  0x3c   : > { %v220_v32 = vadd.f32 %v219_v31, %v218_v26  ;;  %v221_v33 = vmul.f32 0.125, %v213_v30  ;;  %2385 = vmatprep.subr.bf16.mxu1 %v2747_v0  ;;  %v184_v26 = vld [vmem:[#allocation2 + $0xc8] sm:$0xff]  ;;  %v203_v30 = vld [vmem:[#allocation2 + $0x160] sm:$0xff] }
  0x3d   : > { %2366 = vmatpush3.bf16.msra.mxu0 %v2365_v27  ;;  %v185_v27 = vld [vmem:[#allocation2 + $0xd0] sm:$0xff]  ;;  %v2392_v31 = vpack.c.bf16 %v203_v30, %v202_v29 }
  0x3e   : > { %2367 = vmatprep.subr.bf16.mxu0 %v2747_v0  ;;  %v222_v37 = vmul.f32 0.125, %v220_v32  ;;  %v223_v38 = vmul.f32 %v221_v33, %v221_v33  ;;  %v2413_v28 = vpack.c.bf16 %v185_v27, %v184_v26  ;;  %v186_v32 = vld [vmem:[#allocation2 + $0xd8] sm:$0xff]  ;;  %v535_v27 = vld [vmem:[#allocation2 + $0x2c0] sm:$0xff]  ;;  %v537_v30 = vld [vmem:[#allocation2 + $0x2d0] sm:$0xff] }
  0x3f   : > { %2387 = vmatpush3.bf16.msra.mxu1 %v2386_v19 }
  0x40   : > { %v224_v39 = vsub.f32 %v222_v37, %v223_v38  ;;  %2388 = vmatprep.subr.bf16.mxu1 %v2747_v0  ;;  %v2395_v37 = vpack.c.bf16 %v205_v36, %v204_v35  ;;  %v188_v38 = vld [vmem:[#allocation2 + $0xe8] sm:$0xff]  ;;  %v541_v36 = vld [vmem:[#allocation2 + $0x2f0] sm:$0xff] }
  0x41   : > { %2369 = vmatpush3.bf16.msra.mxu0 %v2368_v34 }
  0x42   : > { %2370 = vmatprep.subr.bf16.mxu0 %v2747_v0  ;;  %v225_v43 = vmax.f32 %v224_v39, 0.0  ;;  %v189_v39 = vld [vmem:[#allocation2 + $0xf0] sm:$0xff] }
  0x43   : > { %2390 = vmatpush3.bf16.msra.mxu1 %v2389_v25  ;;  %v534_v25 = vld [vmem:[#allocation2 + $0x2b8] sm:$0xff] }
  0x44   : > { %v226_v44 = vadd.f32 1e-05, %v225_v43  ;;  %2391 = vmatprep.subr.bf16.mxu1 %v2747_v0  ;;  %v2398_v43 = vpack.c.bf16 %v207_v42, %v206_v41  ;;  %v2455_v26 = vpack.c.bf16 %v534_v25, %v533_v24  ;;  %v543_v41 = vld [vmem:[#allocation2 + $0x300] sm:$0xff]  ;;  %v544_v42 = vld [vmem:[#allocation2 + $0x308] sm:$0xff] }
  0x45   : > { %2372 = vmatpush3.bf16.msra.mxu0 %v2371_v40  ;;  %v2419_v40 = vpack.c.bf16 %v189_v39, %v188_v38 }
  0x46   : > { %2373 = vmatprep.subr.bf16.mxu0 %v2747_v0  ;;  %2688 = vrsqrt.f32 %v226_v44  ;;  %v190_v44 = vld [vmem:[#allocation2 + $0xf8] sm:$0xff] }
  0x47   : > { %2393 = vmatpush3.bf16.msra.mxu1 %v2392_v31  ;;  %v538_v31 = vld [vmem:[#allocation2 + $0x2d8] sm:$0xff] }
  0x48   : > { %2394 = vmatprep.subr.bf16.mxu1 %v2747_v0 }
  0x49   : > { %2375 = vmatpush3.bf16.msra.mxu0 %v2374_v45  ;;  %v191_v45 = vld [vmem:[#allocation2 + $0x100] sm:$0xff] }
  0x4a   : > { %2400 = vmatprep.subr.bf16.mxu0 %v2747_v0  ;;  %v2422_v46 = vpack.c.bf16 %v191_v45, %v190_v44  ;;  %v497_v44 = vld [vmem:[#allocation2 + $0x190] sm:$0xff]  ;;  %v498_v45 = vld [vmem:[#allocation2 + $0x198] sm:$0xff] }
  0x4b   : > { %2396 = vmatpush3.bf16.msra.mxu1 %v2395_v37  ;;  %v542_v37 = vld [vmem:[#allocation2 + $0x2f8] sm:$0xff] }
  0x4c   : > { %2397 = vmatprep.subr.bf16.mxu1 %v2747_v0  ;;  %v2467_v38 = vpack.c.bf16 %v542_v37, %v541_v36 }
  0x4f   : > { %2399 = vmatpush3.bf16.msra.mxu1 %v2398_v43  ;;  %v2470_v43 = vpack.c.bf16 %v544_v42, %v543_v41 }
  0x50   : > { %v2689_v50 = vpop.eup %2688  ;;  %2424 = vmatprep.subr.bf16.mxu1 %v2747_v0 }
  0x51   : > { %v228_v51 = vmul.f32 %v2689_v50, %v155_v48 }
  0x52   : > { %1965 = vmatmul.mubr.f32.vlgmr.msra.gmra.mrb[0].mxu1 %v2827_v10 }
  0x53   : > { %v229_v53 = vmul.f32 %v228_v51, %v221_v33  ;;  %v234_v54 = vrot.slane %v228_v51, %v2840_v49  ;;  %v187_v33 = vld [vmem:[#allocation2 + $0xe0] sm:$0xff]  ;;  %2034 = vmatprep.mubr.msk.f32.mxu1 %vm2748_vm0, %v2749_v1 }
  0x54   : > { %v2416_v34 = vpack.c.bf16 %v187_v33, %v186_v32  ;;  %v2461_v32 = vpack.c.bf16 %v538_v31, %v537_v30  ;;  %v539_v33 = vld [vmem:[#allocation2 + $0x2e0] sm:$0xff] }
  0x55   : > { %v230_v55 = vsub.f32 %v156_v52, %v229_v53  ;;  %v235_v56 = vmul.f32 %v234_v54, %v2827_v10 }
  0x57   : > { %v239_v57 = vrot.slane %v230_v55, %v2840_v49 }
  0x59   : > { %v240_v58 = vadd.f32 %v239_v57, %v235_v56 }
  0x5b   : > { %v241_v59 = vmax.f32 %v240_v58, 0.0 }
  0x5d   : > { %1930 = vmatmul.mubr.f32.vlgmr.msra.gmra.mrb[0].mxu0 %v241_v59 }
  0x5e   : > { %1999 = vmatprep.mubr.msk.f32.mxu0 %vm2748_vm0, %v2749_v1  ;;  %2402 = vmatpush3.bf16.msra.mxu0 %v2401_v3 }
  0x5f   : > { %2403 = vmatprep.subr.bf16.mxu0 %v2747_v0 }
  0x62   : > { %2405 = vmatpush3.bf16.msra.mxu0 %v2404_v9  ;;  %v158_v9 = vld [vmem:[#allocation2 + $0x3] sm:$0x1] }
  0x63   : > { %2406 = vmatprep.subr.bf16.mxu0 %v2747_v0 }
  0x66   : > { %2408 = vmatpush3.bf16.msra.mxu0 %v2407_v16  ;;  %v529_v16 = vld [vmem:[#allocation2 + $0x290] sm:$0xff] }
  0x67   : > { %2409 = vmatprep.subr.bf16.mxu0 %v2747_v0  ;;  %v2449_v19 = vpack.c.bf16 %v530_v17, %v529_v16 }
  0x6a   : > { %2411 = vmatpush3.bf16.msra.mxu0 %v2410_v22  ;;  %v532_v22 = vld [vmem:[#allocation2 + $0x2a8] sm:$0xff] }
  0x6b   : > { %2412 = vmatprep.subr.bf16.mxu0 %v2747_v0  ;;  %v2452_v23 = vpack.c.bf16 %v532_v22, %v531_v21 }
  0x6e   : > { %2414 = vmatpush3.bf16.msra.mxu0 %v2413_v28  ;;  %v536_v28 = vld [vmem:[#allocation2 + $0x2c8] sm:$0xff] }
  0x6f   : > { %2415 = vmatprep.subr.bf16.mxu0 %v2747_v0  ;;  %v2458_v29 = vpack.c.bf16 %v536_v28, %v535_v27 }
  0x72   : > { %2417 = vmatpush3.bf16.msra.mxu0 %v2416_v34  ;;  %v540_v34 = vld [vmem:[#allocation2 + $0x2e8] sm:$0xff] }
  0x73   : > { %2418 = vmatprep.subr.bf16.mxu0 %v2747_v0  ;;  %v2464_v35 = vpack.c.bf16 %v540_v34, %v539_v33 }
  0x76   : > { %2420 = vmatpush3.bf16.msra.mxu0 %v2419_v40 }
  0x77   : > { %2421 = vmatprep.subr.bf16.mxu0 %v2747_v0 }
  0x7a   : > { %2423 = vmatpush3.bf16.msra.mxu0 %v2422_v46  ;;  %v2425_v46 = vpack.c.bf16 %v498_v45, %v497_v44  ;;  %v514_v44 = vld [vmem:[#allocation2 + $0x218] sm:$0xff] }
  0x7b   : > { %2448 = vmatprep.subr.bf16.mxu0 %v2747_v0 }
  0x7c   : > { %2426 = vmatpush3.bf16.msra.mxu1 %v2425_v46  ;;  %v515_v46 = vld [vmem:[#allocation2 + $0x220] sm:$0xff] }
  0x7d   : > { %2427 = vmatprep.subr.bf16.mxu1 %v2747_v0 }
 0x125   : > { %v412_v39 = vpop.f32.mrb[0].mxu1 }
 0x126   : > { %v1966_v40 = vpop.f32.mrb[1].mxu1 }
 0x130   : > { %v308_v47 = vpop.f32.mrb[0].mxu0 }
 0x131   : > { %v312_v48 = vrot.slane %v308_v47, 4  ;;  %v318_v50 = vmul.f32 %v308_v47, %v308_v47  ;;  %v1931_v51 = vpop.f32.mrb[1].mxu0 }
 0x132   : > { %v501_v51 = vld [vmem:[#allocation2 + $0x1b0] sm:$0xff] }
 0x133   : > { %v313_v52 = vadd.f32 %v312_v48, %v308_v47  ;;  %v319_v53 = vrot.slane %v318_v50, 4  ;;  %v500_v48 = vld [vmem:[#allocation2 + $0x1a8] sm:$0xff] }
 0x135   : > { %v314_v54 = vrot.slane %v313_v52, 2  ;;  %v320_v55 = vadd.f32 %v319_v53, %v318_v50 }
 0x137   : > { %v315_v56 = vadd.f32 %v314_v54, %v313_v52  ;;  %v321_v57 = vrot.slane %v320_v55, 2  ;;  %v502_v52 = vld [vmem:[#allocation2 + $0x1b8] sm:$0xff]  ;;  %v503_v54 = vld [vmem:[#allocation2 + $0x1c0] sm:$0xff] }
 0x138   : > { %v2431_v53 = vpack.c.bf16 %v502_v52, %v501_v51  ;;  %v518_v51 = vld [vmem:[#allocation2 + $0x238] sm:$0xff] }
 0x139   : > { %v316_v58 = vrot.slane %v315_v56, 1  ;;  %v322_v59 = vadd.f32 %v321_v57, %v320_v55  ;;  %v504_v55 = vld [vmem:[#allocation2 + $0x1c8] sm:$0xff]  ;;  %v505_v57 = vld [vmem:[#allocation2 + $0x1d0] sm:$0xff] }
 0x13b   : > { %v317_v60 = vadd.f32 %v316_v58, %v315_v56  ;;  %v323_v61 = vrot.slane %v322_v59, 1  ;;  %v2434_v56 = vpack.c.bf16 %v504_v55, %v503_v54  ;;  %v506_v58 = vld [vmem:[#allocation2 + $0x1d8] sm:$0xff]  ;;  %v520_v54 = vld [vmem:[#allocation2 + $0x248] sm:$0xff] }
 0x13d   : > { %v324_v62 = vadd.f32 %v323_v61, %v322_v59  ;;  %v325_v63 = vmul.f32 0.125, %v317_v60  ;;  %v2437_v59 = vpack.c.bf16 %v506_v58, %v505_v57  ;;  %v507_v60 = vld [vmem:[#allocation2 + $0x1e0] sm:$0xff]  ;;  %v508_v61 = vld [vmem:[#allocation2 + $0x1e8] sm:$0xff]  ;;  %v522_v57 = vld [vmem:[#allocation2 + $0x258] sm:$0xff] }
 0x13f   : > { %v326_v10 = vmul.f32 0.125, %v324_v62  ;;  %v327_v2 = vmul.f32 %v325_v63, %v325_v63  ;;  %v2440_v62 = vpack.c.bf16 %v508_v61, %v507_v60  ;;  %v524_v60 = vld [vmem:[#allocation2 + $0x268] sm:$0xff] }
 0x141   : > { %v328_v3 = vsub.f32 %v326_v10, %v327_v2  ;;  %v510_v10 = vld [vmem:[#allocation2 + $0x1f8] sm:$0xff] }
 0x143   : > { %v329_v4 = vmax.f32 %v328_v3, 0.0  ;;  %v511_v3 = vld [vmem:[#allocation2 + $0x200] sm:$0xff] }
 0x145   : > { %v330_v5 = vadd.f32 1e-05, %v329_v4  ;;  %v512_v4 = vld [vmem:[#allocation2 + $0x208] sm:$0xff] }
 0x147   : > { %2690 = vrsqrt.f32 %v330_v5  ;;  %v2446_v5 = vpack.c.bf16 %v512_v4, %v511_v3  ;;  %v528_v3 = vld [vmem:[#allocation2 + $0x288] sm:$0xff] }
 0x151   : > { %v2691_v7 = vpop.eup %2690 }
 0x152   : > { %v332_v8 = vmul.f32 %v2691_v7, %v157_v6  ;;  %v1669_v6 = vld [vmem:[#allocation2 + $0x4] ss:$0 sm:$0xff] }
 0x154   : > { %v333_v11 = vmul.f32 %v332_v8, %v325_v63  ;;  %v338_v12 = vrot.slane %v332_v8, %v2840_v49  ;;  %v509_v63 = vld [vmem:[#allocation2 + $0x1f0] sm:$0xff] }
 0x155   : > { %v2443_v2 = vpack.c.bf16 %v510_v10, %v509_v63  ;;  %v526_v63 = vld [vmem:[#allocation2 + $0x278] sm:$0xff] }
 0x156   : > { %v334_v13 = vsub.f32 %v158_v9, %v333_v11  ;;  %v339_v14 = vmul.f32 %v338_v12, %v308_v47  ;;  %v499_v47 = vld [vmem:[#allocation2 + $0x1a0] sm:$0xff] }
 0x157   : > { %v2428_v50 = vpack.c.bf16 %v500_v48, %v499_v47  ;;  %v516_v47 = vld [vmem:[#allocation2 + $0x228] sm:$0xff] }
 0x158   : > { %v343_v15 = vrot.slane %v334_v13, %v2840_v49  ;;  %v2476_v48 = vpack.c.bf16 %v516_v47, %v515_v46  ;;  %v870_v46 = vld [vmem:[#allocation2 + $0x438] sm:$0xff]  ;;  %v871_v47 = vld [vmem:[#allocation2 + $0x440] sm:$0xff] }
 0x159   : > { %2429 = vmatpush3.bf16.msra.mxu1 %v2428_v50  ;;  %v517_v50 = vld [vmem:[#allocation2 + $0x230] sm:$0xff] }
 0x15a   : > { %v344_v18 = vadd.f32 %v343_v15, %v339_v14  ;;  %2430 = vmatprep.subr.bf16.mxu1 %v2747_v0  ;;  %v2479_v52 = vpack.c.bf16 %v518_v51, %v517_v50  ;;  %v872_v50 = vld [vmem:[#allocation2 + $0x448] sm:$0xff]  ;;  %v873_v51 = vld [vmem:[#allocation2 + $0x450] sm:$0xff] }
 0x15c   : > { %v345_v20 = vmax.f32 %v344_v18, 0.0 }
 0x15d   : > { %2432 = vmatpush3.bf16.msra.mxu1 %v2431_v53  ;;  %v519_v53 = vld [vmem:[#allocation2 + $0x240] sm:$0xff] }
 0x15e   : > { %2000 = vmatmul.mubr.f32.vlgmr.msra.gmra.mrb[2].mxu0 %v345_v20  ;;  %2433 = vmatprep.subr.bf16.mxu1 %v2747_v0  ;;  %v2482_v55 = vpack.c.bf16 %v520_v54, %v519_v53  ;;  %v874_v53 = vld [vmem:[#allocation2 + $0x458] sm:$0xff]  ;;  %v875_v54 = vld [vmem:[#allocation2 + $0x460] sm:$0xff] }
 0x15f   : > { %2450 = vmatpush3.bf16.msra.mxu0 %v2449_v19  ;;  %2069 = vmatprep.mubr.msk.f32.mxu0 %vm2748_vm0, %v2749_v1 }
 0x160   : > { %2451 = vmatprep.subr.bf16.mxu0 %v2747_v0 }
 0x161   : > { %2435 = vmatpush3.bf16.msra.mxu1 %v2434_v56  ;;  %v521_v56 = vld [vmem:[#allocation2 + $0x250] sm:$0xff] }
 0x162   : > { %2436 = vmatprep.subr.bf16.mxu1 %v2747_v0  ;;  %v2485_v58 = vpack.c.bf16 %v522_v57, %v521_v56  ;;  %v876_v56 = vld [vmem:[#allocation2 + $0x468] sm:$0xff]  ;;  %v877_v57 = vld [vmem:[#allocation2 + $0x470] sm:$0xff] }
 0x163   : > { %2453 = vmatpush3.bf16.msra.mxu0 %v2452_v23 }
 0x164   : > { %2454 = vmatprep.subr.bf16.mxu0 %v2747_v0 }
 0x165   : > { %2438 = vmatpush3.bf16.msra.mxu1 %v2437_v59  ;;  %v523_v59 = vld [vmem:[#allocation2 + $0x260] sm:$0xff] }
 0x166   : > { %2439 = vmatprep.subr.bf16.mxu1 %v2747_v0  ;;  %v2488_v61 = vpack.c.bf16 %v524_v60, %v523_v59  ;;  %v878_v59 = vld [vmem:[#allocation2 + $0x478] sm:$0xff]  ;;  %v879_v60 = vld [vmem:[#allocation2 + $0x480] sm:$0xff] }
 0x167   : > { %2456 = vmatpush3.bf16.msra.mxu0 %v2455_v26 }
 0x168   : > { %2457 = vmatprep.subr.bf16.mxu0 %v2747_v0 }
 0x169   : > { %2441 = vmatpush3.bf16.msra.mxu1 %v2440_v62  ;;  %v525_v62 = vld [vmem:[#allocation2 + $0x270] sm:$0xff] }
 0x16a   : > { %2442 = vmatprep.subr.bf16.mxu1 %v2747_v0  ;;  %v2491_v10 = vpack.c.bf16 %v526_v63, %v525_v62  ;;  %v880_v62 = vld [vmem:[#allocation2 + $0x488] sm:$0xff]  ;;  %v881_v63 = vld [vmem:[#allocation2 + $0x490] sm:$0xff] }
 0x16b   : > { %2459 = vmatpush3.bf16.msra.mxu0 %v2458_v29 }
 0x16c   : > { %2460 = vmatprep.subr.bf16.mxu0 %v2747_v0 }
 0x16d   : > { %2444 = vmatpush3.bf16.msra.mxu1 %v2443_v2  ;;  %v527_v2 = vld [vmem:[#allocation2 + $0x280] sm:$0xff] }
 0x16e   : > { %2445 = vmatprep.subr.bf16.mxu1 %v2747_v0  ;;  %v2494_v4 = vpack.c.bf16 %v528_v3, %v527_v2  ;;  %v834_v2 = vld [vmem:[#allocation2 + $0x318] sm:$0xff]  ;;  %v835_v3 = vld [vmem:[#allocation2 + $0x320] sm:$0xff] }
 0x16f   : > { %2462 = vmatpush3.bf16.msra.mxu0 %v2461_v32  ;;  %v492_v32 = vld [vmem:[#allocation2 + $0x188] sm:$0x1] }
 0x170   : > { %2463 = vmatprep.subr.bf16.mxu0 %v2747_v0 }
 0x171   : > { %2447 = vmatpush3.bf16.msra.mxu1 %v2446_v5 }
 0x172   : > { %2472 = vmatprep.subr.bf16.mxu1 %v2747_v0 }
 0x173   : > { %2465 = vmatpush3.bf16.msra.mxu0 %v2464_v35  ;;  %v493_v35 = vld [vmem:[#allocation2 + $0x189] sm:$0x1] }
 0x174   : > { %2466 = vmatprep.subr.bf16.mxu0 %v2747_v0 }
 0x177   : > { %2468 = vmatpush3.bf16.msra.mxu0 %v2467_v38 }
 0x178   : > { %2469 = vmatprep.subr.bf16.mxu0 %v2747_v0 }
 0x17b   : > { %2471 = vmatpush3.bf16.msra.mxu0 %v2470_v43  ;;  %v513_v43 = vld [vmem:[#allocation2 + $0x210] sm:$0xff] }
 0x17c   : > { %2496 = vmatprep.subr.bf16.mxu0 %v2747_v0  ;;  %v2473_v45 = vpack.c.bf16 %v514_v44, %v513_v43  ;;  %v868_v43 = vld [vmem:[#allocation2 + $0x428] sm:$0xff]  ;;  %v869_v44 = vld [vmem:[#allocation2 + $0x430] sm:$0xff] }
 0x231   : > { %v482_v7 = vpop.f32.mrb[2].mxu0 }
 0x232   : > { %v483_v8 = vadd.f32 %v482_v7, %v412_v39  ;;  %v2001_v9 = vpop.f32.mrb[3].mxu0 }
 0x234   : > { %v490_v11 = vadd.f32 %v1669_v6, %v483_v8 }
 0x236   : > { %v491_v12 = vmax.f32 %v490_v11, 0.0 }
 0x238   : > { %v545_v13 = vrot.slane %v491_v12, 4  ;;  %v551_v14 = vmul.f32 %v491_v12, %v491_v12  ;;  %2070 = vmatmul.mubr.f32.vlgmr.msra.gmra.mrb[4].mxu0 %v491_v12 }
 0x239   : > { %2139 = vmatprep.mubr.msk.f32.mxu0 %vm2748_vm0, %v2749_v1 }
 0x23a   : > { %v546_v15 = vadd.f32 %v545_v13, %v491_v12  ;;  %v552_v16 = vrot.slane %v551_v14, 4 }
 0x23c   : > { %v547_v17 = vrot.slane %v546_v15, 2  ;;  %v553_v18 = vadd.f32 %v552_v16, %v551_v14 }
 0x23e   : > { %v548_v19 = vadd.f32 %v547_v17, %v546_v15  ;;  %v554_v20 = vrot.slane %v553_v18, 2 }
 0x240   : > { %v555_v21 = vadd.f32 %v554_v20, %v553_v18  ;;  %v549_v22 = vrot.slane %v548_v19, 1 }
 0x242   : > { %v556_v23 = vrot.slane %v555_v21, 1  ;;  %v550_v24 = vadd.f32 %v549_v22, %v548_v19 }
 0x244   : > { %v557_v25 = vadd.f32 %v556_v23, %v555_v21  ;;  %v558_v26 = vmul.f32 0.125, %v550_v24 }
 0x246   : > { %v559_v27 = vmul.f32 0.125, %v557_v25  ;;  %v560_v28 = vmul.f32 %v558_v26, %v558_v26 }
 0x248   : > { %v561_v29 = vsub.f32 %v559_v27, %v560_v28 }
 0x24a   : > { %v562_v30 = vmax.f32 %v561_v29, 0.0  ;;  %v494_v29 = vld [vmem:[#allocation2 + $0x18a] sm:$0x1] }
 0x24c   : > { %v563_v31 = vadd.f32 1e-05, %v562_v30 }
 0x24e   : > { %2692 = vrsqrt.f32 %v563_v31 }
 0x258   : > { %v2693_v33 = vpop.eup %2692 }
 0x259   : > { %v565_v34 = vmul.f32 %v2693_v33, %v492_v32  ;;  %v495_v32 = vld [vmem:[#allocation2 + $0x18b] sm:$0x1] }
 0x25b   : > { %v566_v36 = vmul.f32 %v565_v34, %v558_v26  ;;  %v571_v37 = vrot.slane %v565_v34, %v2840_v49 }
 0x25d   : > { %v567_v38 = vsub.f32 %v493_v35, %v566_v36  ;;  %v572_v39 = vmul.f32 %v571_v37, %v491_v12 }
 0x25f   : > { %v576_v40 = vrot.slane %v567_v38, %v2840_v49  ;;  %v866_v38 = vld [vmem:[#allocation2 + $0x418] sm:$0xff] }
 0x261   : > { %v577_v41 = vadd.f32 %v576_v40, %v572_v39  ;;  %v867_v39 = vld [vmem:[#allocation2 + $0x420] sm:$0xff] }
 0x263   : > { %v578_v42 = vmax.f32 %v577_v41, 0.0  ;;  %v2521_v41 = vpack.c.bf16 %v867_v39, %v866_v38 }
 0x265   : > { %2035 = vmatmul.mubr.f32.vlgmr.msra.gmra.mrb[2].mxu1 %v578_v42 }
 0x266   : > { %2104 = vmatprep.mubr.msk.f32.mxu1 %vm2748_vm0, %v2749_v1  ;;  %2474 = vmatpush3.bf16.msra.mxu1 %v2473_v45  ;;  %v2524_v45 = vpack.c.bf16 %v869_v44, %v868_v43 }
 0x267   : > { %2475 = vmatprep.subr.bf16.mxu1 %v2747_v0 }
 0x26a   : > { %2477 = vmatpush3.bf16.msra.mxu1 %v2476_v48  ;;  %v2527_v48 = vpack.c.bf16 %v871_v47, %v870_v46 }
 0x26b   : > { %2478 = vmatprep.subr.bf16.mxu1 %v2747_v0 }
 0x26e   : > { %2480 = vmatpush3.bf16.msra.mxu1 %v2479_v52  ;;  %v2530_v52 = vpack.c.bf16 %v873_v51, %v872_v50 }
 0x26f   : > { %2481 = vmatprep.subr.bf16.mxu1 %v2747_v0 }
 0x272   : > { %2483 = vmatpush3.bf16.msra.mxu1 %v2482_v55  ;;  %v2533_v55 = vpack.c.bf16 %v875_v54, %v874_v53  ;;  %v829_v53 = vld [vmem:[#allocation2 + $0x310] sm:$0x1] }
 0x273   : > { %2484 = vmatprep.subr.bf16.mxu1 %v2747_v0 }
 0x276   : > { %2486 = vmatpush3.bf16.msra.mxu1 %v2485_v58  ;;  %v2536_v58 = vpack.c.bf16 %v877_v57, %v876_v56  ;;  %v830_v56 = vld [vmem:[#allocation2 + $0x311] sm:$0x1] }
 0x277   : > { %2487 = vmatprep.subr.bf16.mxu1 %v2747_v0 }
 0x27a   : > { %2489 = vmatpush3.bf16.msra.mxu1 %v2488_v61  ;;  %v2539_v61 = vpack.c.bf16 %v879_v60, %v878_v59 }
 0x27b   : > { %2490 = vmatprep.subr.bf16.mxu1 %v2747_v0 }
 0x27e   : > { %2492 = vmatpush3.bf16.msra.mxu1 %v2491_v10  ;;  %v2542_v10 = vpack.c.bf16 %v881_v63, %v880_v62 }
 0x27f   : > { %2493 = vmatprep.subr.bf16.mxu1 %v2747_v0 }
 0x282   : > { %2495 = vmatpush3.bf16.msra.mxu1 %v2494_v4  ;;  %v2497_v4 = vpack.c.bf16 %v835_v3, %v834_v2  ;;  %v851_v2 = vld [vmem:[#allocation2 + $0x3a0] sm:$0xff] }
 0x283   : > { %2520 = vmatprep.subr.bf16.mxu1 %v2747_v0 }
 0x284   : > { %2498 = vmatpush3.bf16.msra.mxu0 %v2497_v4  ;;  %v852_v4 = vld [vmem:[#allocation2 + $0x3a8] sm:$0xff] }
 0x285   : > { %2499 = vmatprep.subr.bf16.mxu0 %v2747_v0 }
 0x30b   : > { %v2900_v5 = vpop.f32.mrb[4].mxu0 }
 0x30c   : > { %v2071_v6 = vpop.f32.mrb[5].mxu0 }
 0x30d   : > { %v836_v6 = vld [vmem:[#allocation2 + $0x328] sm:$0xff] }
 0x338   : > { %v645_v7 = vpop.f32.mrb[2].mxu1 }
 0x339   : > { %v649_v8 = vrot.slane %v645_v7, 4  ;;  %v655_v9 = vmul.f32 %v645_v7, %v645_v7  ;;  %v2036_v11 = vpop.f32.mrb[3].mxu1 }
 0x33a   : > { %v839_v11 = vld [vmem:[#allocation2 + $0x340] sm:$0xff] }
 0x33b   : > { %v650_v12 = vadd.f32 %v649_v8, %v645_v7  ;;  %v656_v13 = vrot.slane %v655_v9, 4 }
 0x33d   : > { %v651_v14 = vrot.slane %v650_v12, 2  ;;  %v657_v15 = vadd.f32 %v656_v13, %v655_v9  ;;  %v838_v9 = vld [vmem:[#allocation2 + $0x338] sm:$0xff]  ;;  %v840_v13 = vld [vmem:[#allocation2 + $0x348] sm:$0xff] }
 0x33f   : > { %v652_v16 = vadd.f32 %v651_v14, %v650_v12  ;;  %v658_v17 = vrot.slane %v657_v15, 2  ;;  %v2503_v12 = vpack.c.bf16 %v839_v11, %v838_v9  ;;  %v841_v14 = vld [vmem:[#allocation2 + $0x350] sm:$0xff]  ;;  %v855_v9 = vld [vmem:[#allocation2 + $0x3c0] sm:$0xff] }
 0x341   : > { %v653_v18 = vrot.slane %v652_v16, 1  ;;  %v659_v19 = vadd.f32 %v658_v17, %v657_v15  ;;  %v2506_v15 = vpack.c.bf16 %v841_v14, %v840_v13  ;;  %v843_v17 = vld [vmem:[#allocation2 + $0x360] sm:$0xff]  ;;  %v857_v13 = vld [vmem:[#allocation2 + $0x3d0] sm:$0xff] }
 0x343   : > { %v654_v20 = vadd.f32 %v653_v18, %v652_v16  ;;  %v660_v21 = vrot.slane %v659_v19, 1  ;;  %v842_v16 = vld [vmem:[#allocation2 + $0x358] sm:$0xff] }
 0x344   : > { %v2509_v18 = vpack.c.bf16 %v843_v17, %v842_v16  ;;  %v859_v16 = vld [vmem:[#allocation2 + $0x3e0] sm:$0xff] }
 0x345   : > { %v661_v22 = vadd.f32 %v660_v21, %v659_v19  ;;  %v662_v23 = vmul.f32 0.125, %v654_v20  ;;  %v844_v19 = vld [vmem:[#allocation2 + $0x368] sm:$0xff]  ;;  %v845_v20 = vld [vmem:[#allocation2 + $0x370] sm:$0xff] }
 0x346   : > { %v2512_v21 = vpack.c.bf16 %v845_v20, %v844_v19  ;;  %v861_v19 = vld [vmem:[#allocation2 + $0x3f0] sm:$0xff] }
 0x347   : > { %v663_v24 = vmul.f32 0.125, %v661_v22  ;;  %v664_v25 = vmul.f32 %v662_v23, %v662_v23  ;;  %v846_v22 = vld [vmem:[#allocation2 + $0x378] sm:$0xff] }
 0x349   : > { %v665_v26 = vsub.f32 %v663_v24, %v664_v25  ;;  %v848_v25 = vld [vmem:[#allocation2 + $0x388] sm:$0xff] }
 0x34b   : > { %v666_v27 = vmax.f32 %v665_v26, 0.0  ;;  %v849_v26 = vld [vmem:[#allocation2 + $0x390] sm:$0xff] }
 0x34d   : > { %v667_v28 = vadd.f32 1e-05, %v666_v27  ;;  %v2518_v27 = vpack.c.bf16 %v849_v26, %v848_v25  ;;  %v865_v25 = vld [vmem:[#allocation2 + $0x410] sm:$0xff] }
 0x34f   : > { %2694 = vrsqrt.f32 %v667_v28  ;;  %v1670_v28 = vld [vmem:[#allocation2 + $0x18c] ss:$0 sm:$0xff] }
 0x359   : > { %v2695_v30 = vpop.eup %2694 }
 0x35a   : > { %v669_v31 = vmul.f32 %v2695_v30, %v494_v29 }
 0x35c   : > { %v670_v33 = vmul.f32 %v669_v31, %v662_v23  ;;  %v675_v34 = vrot.slane %v669_v31, %v2840_v49  ;;  %v847_v23 = vld [vmem:[#allocation2 + $0x380] sm:$0xff] }
 0x35d   : > { %v2515_v24 = vpack.c.bf16 %v847_v23, %v846_v22  ;;  %v863_v22 = vld [vmem:[#allocation2 + $0x400] sm:$0xff] }
 0x35e   : > { %v671_v35 = vsub.f32 %v495_v32, %v670_v33  ;;  %v676_v36 = vmul.f32 %v675_v34, %v645_v7  ;;  %v837_v7 = vld [vmem:[#allocation2 + $0x330] sm:$0xff] }
 0x35f   : > { %v2500_v8 = vpack.c.bf16 %v837_v7, %v836_v6  ;;  %v853_v6 = vld [vmem:[#allocation2 + $0x3b0] sm:$0xff] }
 0x360   : > { %v680_v37 = vrot.slane %v671_v35, %v2840_v49  ;;  %v2548_v7 = vpack.c.bf16 %v853_v6, %v852_v4  ;;  %v1207_v4 = vld [vmem:[#allocation2 + $0x5c0] sm:$0xff]  ;;  %v1208_v6 = vld [vmem:[#allocation2 + $0x5c8] sm:$0xff] }
 0x361   : > { %2501 = vmatpush3.bf16.msra.mxu0 %v2500_v8  ;;  %v854_v8 = vld [vmem:[#allocation2 + $0x3b8] sm:$0xff] }
 0x362   : > { %v681_v40 = vadd.f32 %v680_v37, %v676_v36  ;;  %2502 = vmatprep.subr.bf16.mxu0 %v2747_v0  ;;  %v2551_v11 = vpack.c.bf16 %v855_v9, %v854_v8  ;;  %v1209_v8 = vld [vmem:[#allocation2 + $0x5d0] sm:$0xff]  ;;  %v1210_v9 = vld [vmem:[#allocation2 + $0x5d8] sm:$0xff] }
 0x364   : > { %v682_v42 = vmax.f32 %v681_v40, 0.0 }
 0x365   : > { %2504 = vmatpush3.bf16.msra.mxu0 %v2503_v12  ;;  %v856_v12 = vld [vmem:[#allocation2 + $0x3c8] sm:$0xff] }
 0x366   : > { %2105 = vmatmul.mubr.f32.vlgmr.msra.gmra.mrb[4].mxu1 %v682_v42  ;;  %2505 = vmatprep.subr.bf16.mxu0 %v2747_v0  ;;  %v2554_v14 = vpack.c.bf16 %v857_v13, %v856_v12  ;;  %v1211_v12 = vld [vmem:[#allocation2 + $0x5e0] sm:$0xff]  ;;  %v1212_v13 = vld [vmem:[#allocation2 + $0x5e8] sm:$0xff] }
 0x367   : > { %2522 = vmatpush3.bf16.msra.mxu1 %v2521_v41  ;;  %2174 = vmatprep.mubr.msk.f32.mxu1 %vm2748_vm0, %v2749_v1 }
 0x368   : > { %2523 = vmatprep.subr.bf16.mxu1 %v2747_v0 }
 0x369   : > { %2507 = vmatpush3.bf16.msra.mxu0 %v2506_v15  ;;  %v858_v15 = vld [vmem:[#allocation2 + $0x3d8] sm:$0xff] }
 0x36a   : > { %2508 = vmatprep.subr.bf16.mxu0 %v2747_v0  ;;  %v2557_v17 = vpack.c.bf16 %v859_v16, %v858_v15  ;;  %v1213_v15 = vld [vmem:[#allocation2 + $0x5f0] sm:$0xff]  ;;  %v1214_v16 = vld [vmem:[#allocation2 + $0x5f8] sm:$0xff] }
 0x36b   : > { %2525 = vmatpush3.bf16.msra.mxu1 %v2524_v45 }
 0x36c   : > { %2526 = vmatprep.subr.bf16.mxu1 %v2747_v0 }
 0x36d   : > { %2510 = vmatpush3.bf16.msra.mxu0 %v2509_v18  ;;  %v860_v18 = vld [vmem:[#allocation2 + $0x3e8] sm:$0xff] }
 0x36e   : > { %2511 = vmatprep.subr.bf16.mxu0 %v2747_v0  ;;  %v2560_v20 = vpack.c.bf16 %v861_v19, %v860_v18  ;;  %v1215_v18 = vld [vmem:[#allocation2 + $0x600] sm:$0xff]  ;;  %v1216_v19 = vld [vmem:[#allocation2 + $0x608] sm:$0xff] }
 0x36f   : > { %2528 = vmatpush3.bf16.msra.mxu1 %v2527_v48 }
 0x370   : > { %2529 = vmatprep.subr.bf16.mxu1 %v2747_v0 }
 0x371   : > { %2513 = vmatpush3.bf16.msra.mxu0 %v2512_v21  ;;  %v862_v21 = vld [vmem:[#allocation2 + $0x3f8] sm:$0xff] }
 0x372   : > { %2514 = vmatprep.subr.bf16.mxu0 %v2747_v0  ;;  %v2563_v23 = vpack.c.bf16 %v863_v22, %v862_v21  ;;  %v1217_v21 = vld [vmem:[#allocation2 + $0x610] sm:$0xff]  ;;  %v1218_v22 = vld [vmem:[#allocation2 + $0x618] sm:$0xff] }
 0x373   : > { %2531 = vmatpush3.bf16.msra.mxu1 %v2530_v52 }
 0x374   : > { %2532 = vmatprep.subr.bf16.mxu1 %v2747_v0 }
 0x375   : > { %2516 = vmatpush3.bf16.msra.mxu0 %v2515_v24  ;;  %v864_v24 = vld [vmem:[#allocation2 + $0x408] sm:$0xff] }
 0x376   : > { %2517 = vmatprep.subr.bf16.mxu0 %v2747_v0  ;;  %v2566_v26 = vpack.c.bf16 %v865_v25, %v864_v24  ;;  %v1171_v24 = vld [vmem:[#allocation2 + $0x4a0] sm:$0xff]  ;;  %v1172_v25 = vld [vmem:[#allocation2 + $0x4a8] sm:$0xff] }
 0x377   : > { %2534 = vmatpush3.bf16.msra.mxu1 %v2533_v55 }
 0x378   : > { %2535 = vmatprep.subr.bf16.mxu1 %v2747_v0 }
 0x379   : > { %2519 = vmatpush3.bf16.msra.mxu0 %v2518_v27 }
 0x37a   : > { %2544 = vmatprep.subr.bf16.mxu0 %v2747_v0 }
 0x37b   : > { %2537 = vmatpush3.bf16.msra.mxu1 %v2536_v58 }
 0x37c   : > { %2538 = vmatprep.subr.bf16.mxu1 %v2747_v0 }
 0x37f   : > { %2540 = vmatpush3.bf16.msra.mxu1 %v2539_v61 }
 0x380   : > { %2541 = vmatprep.subr.bf16.mxu1 %v2747_v0 }
 0x383   : > { %2543 = vmatpush3.bf16.msra.mxu1 %v2542_v10  ;;  %v850_v10 = vld [vmem:[#allocation2 + $0x398] sm:$0xff] }
 0x384   : > { %2568 = vmatprep.subr.bf16.mxu1 %v2747_v0  ;;  %v2545_v3 = vpack.c.bf16 %v851_v2, %v850_v10  ;;  %v1205_v10 = vld [vmem:[#allocation2 + $0x5b0] sm:$0xff]  ;;  %v1206_v2 = vld [vmem:[#allocation2 + $0x5b8] sm:$0xff] }
 0x439   : > { %v819_v29 = vpop.f32.mrb[4].mxu1 }
 0x43a   : > { %v820_v30 = vadd.f32 %v819_v29, %v2900_v5  ;;  %v2106_v31 = vpop.f32.mrb[5].mxu1 }
 0x43c   : > { %v827_v32 = vadd.f32 %v1670_v28, %v820_v30 }
 0x43e   : > { %v828_v33 = vmax.f32 %v827_v32, 0.0 }
 0x440   : > { %v882_v34 = vrot.slane %v828_v33, 4  ;;  %v888_v35 = vmul.f32 %v828_v33, %v828_v33  ;;  %2175 = vmatmul.mubr.f32.vlgmr.msra.gmra.mrb[6].mxu1 %v828_v33 }
 0x441   : > { %2244 = vmatprep.mubr.msk.f32.mxu1 %vm2748_vm0, %v2749_v1 }
 0x442   : > { %v883_v36 = vadd.f32 %v882_v34, %v828_v33  ;;  %v889_v37 = vrot.slane %v888_v35, 4 }
 0x444   : > { %v884_v38 = vrot.slane %v883_v36, 2  ;;  %v890_v39 = vadd.f32 %v889_v37, %v888_v35 }
 0x446   : > { %v885_v40 = vadd.f32 %v884_v38, %v883_v36  ;;  %v891_v41 = vrot.slane %v890_v39, 2 }
 0x448   : > { %v892_v42 = vadd.f32 %v891_v41, %v890_v39  ;;  %v886_v43 = vrot.slane %v885_v40, 1 }
 0x44a   : > { %v893_v44 = vrot.slane %v892_v42, 1  ;;  %v887_v45 = vadd.f32 %v886_v43, %v885_v40 }
 0x44c   : > { %v894_v5 = vadd.f32 %v893_v44, %v892_v42  ;;  %v895_v46 = vmul.f32 0.125, %v887_v45 }
 0x44e   : > { %v896_v47 = vmul.f32 0.125, %v894_v5  ;;  %v897_v48 = vmul.f32 %v895_v46, %v895_v46 }
 0x450   : > { %v898_v50 = vsub.f32 %v896_v47, %v897_v48 }
 0x452   : > { %v899_v51 = vmax.f32 %v898_v50, 0.0  ;;  %v831_v50 = vld [vmem:[#allocation2 + $0x312] sm:$0x1] }
 0x454   : > { %v900_v52 = vadd.f32 1e-05, %v899_v51 }
 0x456   : > { %2696 = vrsqrt.f32 %v900_v52 }
 0x460   : > { %v2697_v54 = vpop.eup %2696 }
 0x461   : > { %v902_v55 = vmul.f32 %v2697_v54, %v829_v53  ;;  %v832_v53 = vld [vmem:[#allocation2 + $0x313] sm:$0x1] }
 0x463   : > { %v903_v57 = vmul.f32 %v902_v55, %v895_v46  ;;  %v908_v58 = vrot.slane %v902_v55, %v2840_v49 }
 0x465   : > { %v904_v59 = vsub.f32 %v830_v56, %v903_v57  ;;  %v909_v60 = vmul.f32 %v908_v58, %v828_v33 }
 0x467   : > { %v913_v61 = vrot.slane %v904_v59, %v2840_v49  ;;  %v1203_v59 = vld [vmem:[#allocation2 + $0x5a0] sm:$0xff] }
 0x469   : > { %v914_v62 = vadd.f32 %v913_v61, %v909_v60  ;;  %v1204_v60 = vld [vmem:[#allocation2 + $0x5a8] sm:$0xff] }
 0x46b   : > { %v915_v63 = vmax.f32 %v914_v62, 0.0  ;;  %v2593_v62 = vpack.c.bf16 %v1204_v60, %v1203_v59 }
 0x46d   : > { %2140 = vmatmul.mubr.f32.vlgmr.msra.gmra.mrb[6].mxu0 %v915_v63 }
 0x46e   : > { %2209 = vmatprep.mubr.msk.f32.mxu0 %vm2748_vm0, %v2749_v1  ;;  %2546 = vmatpush3.bf16.msra.mxu0 %v2545_v3  ;;  %v2596_v3 = vpack.c.bf16 %v1206_v2, %v1205_v10 }
 0x46f   : > { %2547 = vmatprep.subr.bf16.mxu0 %v2747_v0 }
 0x472   : > { %2549 = vmatpush3.bf16.msra.mxu0 %v2548_v7  ;;  %v2599_v7 = vpack.c.bf16 %v1208_v6, %v1207_v4 }
 0x473   : > { %2550 = vmatprep.subr.bf16.mxu0 %v2747_v0 }
 0x476   : > { %2552 = vmatpush3.bf16.msra.mxu0 %v2551_v11  ;;  %v2602_v11 = vpack.c.bf16 %v1210_v9, %v1209_v8 }
 0x477   : > { %2553 = vmatprep.subr.bf16.mxu0 %v2747_v0 }
 0x47a   : > { %2555 = vmatpush3.bf16.msra.mxu0 %v2554_v14  ;;  %v2605_v14 = vpack.c.bf16 %v1212_v13, %v1211_v12  ;;  %v1166_v12 = vld [vmem:[#allocation2 + $0x498] sm:$0x1] }
 0x47b   : > { %2556 = vmatprep.subr.bf16.mxu0 %v2747_v0 }
 0x47e   : > { %2558 = vmatpush3.bf16.msra.mxu0 %v2557_v17  ;;  %v2608_v17 = vpack.c.bf16 %v1214_v16, %v1213_v15  ;;  %v1167_v15 = vld [vmem:[#allocation2 + $0x499] sm:$0x1] }
 0x47f   : > { %2559 = vmatprep.subr.bf16.mxu0 %v2747_v0 }
 0x482   : > { %2561 = vmatpush3.bf16.msra.mxu0 %v2560_v20  ;;  %v2611_v20 = vpack.c.bf16 %v1216_v19, %v1215_v18 }
 0x483   : > { %2562 = vmatprep.subr.bf16.mxu0 %v2747_v0 }
 0x486   : > { %2564 = vmatpush3.bf16.msra.mxu0 %v2563_v23  ;;  %v2614_v23 = vpack.c.bf16 %v1218_v22, %v1217_v21 }
 0x487   : > { %2565 = vmatprep.subr.bf16.mxu0 %v2747_v0 }
 0x48a   : > { %2567 = vmatpush3.bf16.msra.mxu0 %v2566_v26  ;;  %v2569_v26 = vpack.c.bf16 %v1172_v25, %v1171_v24  ;;  %v1188_v24 = vld [vmem:[#allocation2 + $0x528] sm:$0xff] }
 0x48b   : > { %2592 = vmatprep.subr.bf16.mxu0 %v2747_v0 }
 0x48c   : > { %2570 = vmatpush3.bf16.msra.mxu1 %v2569_v26  ;;  %v1189_v26 = vld [vmem:[#allocation2 + $0x530] sm:$0xff] }
 0x48d   : > { %2571 = vmatprep.subr.bf16.mxu1 %v2747_v0 }
 0x513   : > { %v2937_v27 = vpop.f32.mrb[6].mxu1 }
 0x514   : > { %v2176_v28 = vpop.f32.mrb[7].mxu1 }
 0x515   : > { %v1173_v28 = vld [vmem:[#allocation2 + $0x4b0] sm:$0xff] }
 0x540   : > { %v982_v29 = vpop.f32.mrb[6].mxu0 }
 0x541   : > { %v986_v30 = vrot.slane %v982_v29, 4  ;;  %v992_v31 = vmul.f32 %v982_v29, %v982_v29  ;;  %v2141_v32 = vpop.f32.mrb[7].mxu0 }
 0x542   : > { %v1176_v32 = vld [vmem:[#allocation2 + $0x4c8] sm:$0xff] }
 0x543   : > { %v987_v33 = vadd.f32 %v986_v30, %v982_v29  ;;  %v993_v34 = vrot.slane %v992_v31, 4 }
 0x545   : > { %v988_v35 = vrot.slane %v987_v33, 2  ;;  %v994_v36 = vadd.f32 %v993_v34, %v992_v31  ;;  %v1175_v31 = vld [vmem:[#allocation2 + $0x4c0] sm:$0xff]  ;;  %v1177_v34 = vld [vmem:[#allocation2 + $0x4d0] sm:$0xff] }
 0x547   : > { %v989_v37 = vadd.f32 %v988_v35, %v987_v33  ;;  %v995_v38 = vrot.slane %v994_v36, 2  ;;  %v2575_v33 = vpack.c.bf16 %v1176_v32, %v1175_v31  ;;  %v1178_v35 = vld [vmem:[#allocation2 + $0x4d8] sm:$0xff]  ;;  %v1192_v31 = vld [vmem:[#allocation2 + $0x548] sm:$0xff] }
 0x549   : > { %v990_v39 = vrot.slane %v989_v37, 1  ;;  %v996_v40 = vadd.f32 %v995_v38, %v994_v36  ;;  %v2578_v36 = vpack.c.bf16 %v1178_v35, %v1177_v34  ;;  %v1180_v38 = vld [vmem:[#allocation2 + $0x4e8] sm:$0xff]  ;;  %v1195_v35 = vld [vmem:[#allocation2 + $0x560] sm:$0xff] }
 0x54b   : > { %v991_v41 = vadd.f32 %v990_v39, %v989_v37  ;;  %v997_v42 = vrot.slane %v996_v40, 1  ;;  %v1179_v37 = vld [vmem:[#allocation2 + $0x4e0] sm:$0xff] }
 0x54c   : > { %v2581_v39 = vpack.c.bf16 %v1180_v38, %v1179_v37  ;;  %v1197_v38 = vld [vmem:[#allocation2 + $0x570] sm:$0xff] }
 0x54d   : > { %v998_v43 = vadd.f32 %v997_v42, %v996_v40  ;;  %v999_v44 = vmul.f32 0.125, %v991_v41  ;;  %v1181_v40 = vld [vmem:[#allocation2 + $0x4f0] sm:$0xff]  ;;  %v1182_v41 = vld [vmem:[#allocation2 + $0x4f8] sm:$0xff] }
 0x54e   : > { %v2584_v42 = vpack.c.bf16 %v1182_v41, %v1181_v40  ;;  %v1199_v41 = vld [vmem:[#allocation2 + $0x580] sm:$0xff] }
 0x54f   : > { %v1000_v45 = vmul.f32 0.125, %v998_v43  ;;  %v1001_v5 = vmul.f32 %v999_v44, %v999_v44  ;;  %v1183_v43 = vld [vmem:[#allocation2 + $0x500] sm:$0xff] }
 0x551   : > { %v1002_v46 = vsub.f32 %v1000_v45, %v1001_v5  ;;  %v1185_v5 = vld [vmem:[#allocation2 + $0x510] sm:$0xff] }
 0x553   : > { %v1003_v47 = vmax.f32 %v1002_v46, 0.0  ;;  %v1186_v46 = vld [vmem:[#allocation2 + $0x518] sm:$0xff] }
 0x555   : > { %v1004_v48 = vadd.f32 1e-05, %v1003_v47  ;;  %v2590_v47 = vpack.c.bf16 %v1186_v46, %v1185_v5  ;;  %v1503_v46 = vld [vmem:[#allocation2 + $0x620] sm:$0xff] }
 0x557   : > { %2698 = vrsqrt.f32 %v1004_v48  ;;  %v1671_v48 = vld [vmem:[#allocation2 + $0x314] ss:$0 sm:$0xff] }
 0x561   : > { %v2699_v51 = vpop.eup %2698 }
 0x562   : > { %v1006_v52 = vmul.f32 %v2699_v51, %v831_v50 }
 0x564   : > { %v1007_v54 = vmul.f32 %v1006_v52, %v999_v44  ;;  %v1012_v55 = vrot.slane %v1006_v52, %v2840_v49  ;;  %v1184_v44 = vld [vmem:[#allocation2 + $0x508] sm:$0xff] }
 0x565   : > { %v2587_v45 = vpack.c.bf16 %v1184_v44, %v1183_v43  ;;  %v1201_v44 = vld [vmem:[#allocation2 + $0x590] sm:$0xff] }
 0x566   : > { %v1008_v56 = vsub.f32 %v832_v53, %v1007_v54  ;;  %v1013_v57 = vmul.f32 %v1012_v55, %v982_v29  ;;  %v1174_v29 = vld [vmem:[#allocation2 + $0x4b8] sm:$0xff] }
 0x567   : > { %v2572_v30 = vpack.c.bf16 %v1174_v29, %v1173_v28  ;;  %v1190_v28 = vld [vmem:[#allocation2 + $0x538] sm:$0xff] }
 0x568   : > { %v1017_v58 = vrot.slane %v1008_v56, %v2840_v49  ;;  %v2620_v29 = vpack.c.bf16 %v1190_v28, %v1189_v26  ;;  %v1168_v26 = vld [vmem:[#allocation2 + $0x49a] sm:$0x1] }
 0x569   : > { %2573 = vmatpush3.bf16.msra.mxu1 %v2572_v30  ;;  %v1191_v30 = vld [vmem:[#allocation2 + $0x540] sm:$0xff] }
 0x56a   : > { %v1018_v61 = vadd.f32 %v1017_v58, %v1013_v57  ;;  %2574 = vmatprep.subr.bf16.mxu1 %v2747_v0  ;;  %v2623_v32 = vpack.c.bf16 %v1192_v31, %v1191_v30  ;;  %v1169_v30 = vld [vmem:[#allocation2 + $0x49b] sm:$0x1] }
 0x56c   : > { %v1019_v63 = vmax.f32 %v1018_v61, 0.0 }
 0x56d   : > { %2576 = vmatpush3.bf16.msra.mxu1 %v2575_v33  ;;  %v1193_v33 = vld [vmem:[#allocation2 + $0x550] sm:$0xff] }
 0x56e   : > { %2210 = vmatmul.mubr.f32.vlgmr.msra.gmra.mrb[8].mxu0 %v1019_v63  ;;  %2577 = vmatprep.subr.bf16.mxu1 %v2747_v0 }
 0x56f   : > { %2594 = vmatpush3.bf16.msra.mxu0 %v2593_v62  ;;  %2279 = vmatprep.mubr.msk.f32.mxu0 %vm2748_vm0, %v2749_v1 }
 0x570   : > { %2595 = vmatprep.subr.bf16.mxu0 %v2747_v0 }
 0x571   : > { %2579 = vmatpush3.bf16.msra.mxu1 %v2578_v36  ;;  %v1196_v36 = vld [vmem:[#allocation2 + $0x568] sm:$0xff] }
 0x572   : > { %2580 = vmatprep.subr.bf16.mxu1 %v2747_v0  ;;  %v2629_v37 = vpack.c.bf16 %v1196_v36, %v1195_v35 }
 0x573   : > { %2597 = vmatpush3.bf16.msra.mxu0 %v2596_v3 }
 0x574   : > { %2598 = vmatprep.subr.bf16.mxu0 %v2747_v0 }
 0x575   : > { %2582 = vmatpush3.bf16.msra.mxu1 %v2581_v39  ;;  %v1198_v39 = vld [vmem:[#allocation2 + $0x578] sm:$0xff] }
 0x576   : > { %2583 = vmatprep.subr.bf16.mxu1 %v2747_v0  ;;  %v2632_v40 = vpack.c.bf16 %v1198_v39, %v1197_v38  ;;  %v1516_v38 = vld [vmem:[#allocation2 + $0x688] sm:$0xff] }
 0x577   : > { %2600 = vmatpush3.bf16.msra.mxu0 %v2599_v7 }
 0x578   : > { %2601 = vmatprep.subr.bf16.mxu0 %v2747_v0 }
 0x579   : > { %2585 = vmatpush3.bf16.msra.mxu1 %v2584_v42  ;;  %v1200_v42 = vld [vmem:[#allocation2 + $0x588] sm:$0xff] }
 0x57a   : > { %2586 = vmatprep.subr.bf16.mxu1 %v2747_v0  ;;  %v2635_v43 = vpack.c.bf16 %v1200_v42, %v1199_v41  ;;  %v1518_v41 = vld [vmem:[#allocation2 + $0x698] sm:$0xff] }
 0x57b   : > { %2603 = vmatpush3.bf16.msra.mxu0 %v2602_v11 }
 0x57c   : > { %2604 = vmatprep.subr.bf16.mxu0 %v2747_v0 }
 0x57d   : > { %2588 = vmatpush3.bf16.msra.mxu1 %v2587_v45  ;;  %v1202_v45 = vld [vmem:[#allocation2 + $0x598] sm:$0xff] }
 0x57e   : > { %2589 = vmatprep.subr.bf16.mxu1 %v2747_v0  ;;  %v2638_v5 = vpack.c.bf16 %v1202_v45, %v1201_v44 }
 0x57f   : > { %2606 = vmatpush3.bf16.msra.mxu0 %v2605_v14 }
 0x580   : > { %2607 = vmatprep.subr.bf16.mxu0 %v2747_v0 }
 0x581   : > { %2591 = vmatpush3.bf16.msra.mxu1 %v2590_v47  ;;  %v1504_v47 = vld [vmem:[#allocation2 + $0x628] sm:$0xff] }
 0x582   : > { %2616 = vmatprep.subr.bf16.mxu1 %v2747_v0 }
 0x583   : > { %2609 = vmatpush3.bf16.msra.mxu0 %v2608_v17 }
 0x584   : > { %2610 = vmatprep.subr.bf16.mxu0 %v2747_v0 }
 0x587   : > { %2612 = vmatpush3.bf16.msra.mxu0 %v2611_v20 }
 0x588   : > { %2613 = vmatprep.subr.bf16.mxu0 %v2747_v0 }
 0x58b   : > { %2615 = vmatpush3.bf16.msra.mxu0 %v2614_v23  ;;  %v1187_v23 = vld [vmem:[#allocation2 + $0x520] sm:$0xff] }
 0x58c   : > { %2640 = vmatprep.subr.bf16.mxu0 %v2747_v0  ;;  %v2617_v25 = vpack.c.bf16 %v1188_v24, %v1187_v23 }
 0x641   : > { %v1156_v50 = vpop.f32.mrb[8].mxu0 }
 0x642   : > { %v1157_v51 = vadd.f32 %v1156_v50, %v2937_v27  ;;  %v2211_v52 = vpop.f32.mrb[9].mxu0  ;;  %v2641_v50 = vpack.c.bf16 %v1504_v47, %v1503_v46  ;;  %v1673_v47 = vld [vmem:[#allocation2 + $0x6a0] ss:$0 sm:$0xff] }
 0x644   : > { %v1164_v53 = vadd.f32 %v1671_v48, %v1157_v51  ;;  %v1505_v48 = vld [vmem:[#allocation2 + $0x630] sm:$0xff]  ;;  %v1506_v51 = vld [vmem:[#allocation2 + $0x638] sm:$0xff] }
 0x645   : > { %v2644_v52 = vpack.c.bf16 %v1506_v51, %v1505_v48 }
 0x646   : > { %v1165_v54 = vmax.f32 %v1164_v53, 0.0  ;;  %v1507_v53 = vld [vmem:[#allocation2 + $0x640] sm:$0xff] }
 0x648   : > { %v1219_v55 = vrot.slane %v1165_v54, 4  ;;  %v1225_v56 = vmul.f32 %v1165_v54, %v1165_v54  ;;  %2280 = vmatmul.mubr.f32.vlgmr.msra.gmra.mrb[10].mxu0 %v1165_v54 }
 0x649   : > { %2349 = vmatprep.mubr.msk.f32.mxu0 %vm2748_vm0, %v2749_v1  ;;  %2642 = vmatpush3.bf16.msra.mxu0 %v2641_v50 }
 0x64a   : > { %v1220_v57 = vadd.f32 %v1219_v55, %v1165_v54  ;;  %v1226_v58 = vrot.slane %v1225_v56, 4  ;;  %2643 = vmatprep.subr.bf16.mxu0 %v2747_v0 }
 0x64c   : > { %v1221_v59 = vrot.slane %v1220_v57, 2  ;;  %v1227_v60 = vadd.f32 %v1226_v58, %v1225_v56  ;;  %v1509_v56 = vld [vmem:[#allocation2 + $0x650] sm:$0xff] }
 0x64d   : > { %2645 = vmatpush3.bf16.msra.mxu0 %v2644_v52 }
 0x64e   : > { %v1222_v61 = vadd.f32 %v1221_v59, %v1220_v57  ;;  %v1228_v62 = vrot.slane %v1227_v60, 2  ;;  %2646 = vmatprep.subr.bf16.mxu0 %v2747_v0  ;;  %v1510_v57 = vld [vmem:[#allocation2 + $0x658] sm:$0xff]  ;;  %v1511_v59 = vld [vmem:[#allocation2 + $0x660] sm:$0xff] }
 0x64f   : > { %v2650_v58 = vpack.c.bf16 %v1510_v57, %v1509_v56 }
 0x650   : > { %v1229_v63 = vadd.f32 %v1228_v62, %v1227_v60  ;;  %v1223_v10 = vrot.slane %v1222_v61, 1  ;;  %v1512_v60 = vld [vmem:[#allocation2 + $0x668] sm:$0xff]  ;;  %v1513_v62 = vld [vmem:[#allocation2 + $0x670] sm:$0xff] }
 0x652   : > { %v1230_v2 = vrot.slane %v1229_v63, 1  ;;  %v1224_v3 = vadd.f32 %v1223_v10, %v1222_v61  ;;  %v2653_v61 = vpack.c.bf16 %v1512_v60, %v1511_v59 }
 0x654   : > { %v1231_v27 = vadd.f32 %v1230_v2, %v1229_v63  ;;  %v1232_v4 = vmul.f32 0.125, %v1224_v3  ;;  %v1514_v63 = vld [vmem:[#allocation2 + $0x678] sm:$0xff] }
 0x655   : > { %v2656_v10 = vpack.c.bf16 %v1514_v63, %v1513_v62 }
 0x656   : > { %v1233_v6 = vmul.f32 0.125, %v1231_v27  ;;  %v1234_v7 = vmul.f32 %v1232_v4, %v1232_v4 }
 0x658   : > { %v1235_v8 = vsub.f32 %v1233_v6, %v1234_v7 }
 0x65a   : > { %v1236_v9 = vmax.f32 %v1235_v8, 0.0 }
 0x65c   : > { %v1237_v11 = vadd.f32 1e-05, %v1236_v9 }
 0x65e   : > { %2700 = vrsqrt.f32 %v1237_v11 }
 0x668   : > { %v2701_v13 = vpop.eup %2700 }
 0x669   : > { %v1239_v14 = vmul.f32 %v2701_v13, %v1166_v12 }
 0x66b   : > { %v1240_v16 = vmul.f32 %v1239_v14, %v1232_v4  ;;  %v1245_v17 = vrot.slane %v1239_v14, %v2840_v49 }
 0x66d   : > { %v1241_v18 = vsub.f32 %v1167_v15, %v1240_v16  ;;  %v1246_v19 = vmul.f32 %v1245_v17, %v1165_v54  ;;  %v1508_v54 = vld [vmem:[#allocation2 + $0x648] sm:$0xff] }
 0x66e   : > { %v2647_v55 = vpack.c.bf16 %v1508_v54, %v1507_v53 }
 0x66f   : > { %v1250_v20 = vrot.slane %v1241_v18, %v2840_v49 }
 0x670   : > { %2648 = vmatpush3.bf16.msra.mxu0 %v2647_v55 }
 0x671   : > { %v1251_v21 = vadd.f32 %v1250_v20, %v1246_v19  ;;  %2649 = vmatprep.subr.bf16.mxu0 %v2747_v0 }
 0x673   : > { %v1252_v22 = vmax.f32 %v1251_v21, 0.0 }
 0x674   : > { %2651 = vmatpush3.bf16.msra.mxu0 %v2650_v58 }
 0x675   : > { %2245 = vmatmul.mubr.f32.vlgmr.msra.gmra.mrb[8].mxu1 %v1252_v22  ;;  %2652 = vmatprep.subr.bf16.mxu0 %v2747_v0 }
 0x676   : > { %2314 = vmatprep.mubr.msk.f32.mxu1 %vm2748_vm0, %v2749_v1  ;;  %2618 = vmatpush3.bf16.msra.mxu1 %v2617_v25  ;;  %v1194_v1 = vld [vmem:[#allocation2 + $0x558] sm:$0xff] }
 0x677   : > { %2619 = vmatprep.subr.bf16.mxu1 %v2747_v0  ;;  %v2626_v34 = vpack.c.bf16 %v1194_v1, %v1193_v33 }
 0x678   : > { %2654 = vmatpush3.bf16.msra.mxu0 %v2653_v61 }
 0x679   : > { %2655 = vmatprep.subr.bf16.mxu0 %v2747_v0 }
 0x67a   : > { %2621 = vmatpush3.bf16.msra.mxu1 %v2620_v29 }
 0x67b   : > { %2622 = vmatprep.subr.bf16.mxu1 %v2747_v0 }
 0x67c   : > { %2657 = vmatpush3.bf16.msra.mxu0 %v2656_v10 }
 0x67d   : > { %2658 = vmatprep.subr.bf16.mxu0 %v2747_v0 }
 0x67e   : > { %2624 = vmatpush3.bf16.msra.mxu1 %v2623_v32 }
 0x67f   : > { %2625 = vmatprep.subr.bf16.mxu1 %v2747_v0 }
 0x682   : > { %2627 = vmatpush3.bf16.msra.mxu1 %v2626_v34 }
 0x683   : > { %2628 = vmatprep.subr.bf16.mxu1 %v2747_v0 }
 0x686   : > { %2630 = vmatpush3.bf16.msra.mxu1 %v2629_v37  ;;  %v1515_v37 = vld [vmem:[#allocation2 + $0x680] sm:$0xff] }
 0x687   : > { %2631 = vmatprep.subr.bf16.mxu1 %v2747_v0  ;;  %v2659_v39 = vpack.c.bf16 %v1516_v38, %v1515_v37 }
 0x689   : > { %2660 = vmatpush3.bf16.msra.mxu0 %v2659_v39 }
 0x68a   : > { %2633 = vmatpush3.bf16.msra.mxu1 %v2632_v40  ;;  %2661 = vmatprep.subr.bf16.mxu0 %v2747_v0  ;;  %v1517_v40 = vld [vmem:[#allocation2 + $0x690] sm:$0xff] }
 0x68b   : > { %2634 = vmatprep.subr.bf16.mxu1 %v2747_v0  ;;  %v2662_v42 = vpack.c.bf16 %v1518_v41, %v1517_v40 }
 0x68d   : > { %2663 = vmatpush3.bf16.msra.mxu0 %v2662_v42 }
 0x68e   : > { %2636 = vmatpush3.bf16.msra.mxu1 %v2635_v43  ;;  %v1672_v43 = vld [vmem:[#allocation2 + $0x49c] ss:$0 sm:$0xff] }
 0x68f   : > { %2637 = vmatprep.subr.bf16.mxu1 %v2747_v0 }
 0x692   : > { %2639 = vmatpush3.bf16.msra.mxu1 %v2638_v5 }
 0x71b   : > { %v1423_v2 = vpop.f32.mrb[10].mxu0 }
 0x71c   : > { %v2281_v3 = vpop.f32.mrb[11].mxu0 }
 0x748   : > { %v1319_v27 = vpop.f32.mrb[8].mxu1 }
 0x749   : > { %v1323_v4 = vrot.slane %v1319_v27, 4  ;;  %v1329_v6 = vmul.f32 %v1319_v27, %v1319_v27  ;;  %v2246_v7 = vpop.f32.mrb[9].mxu1 }
 0x74b   : > { %v1324_v8 = vadd.f32 %v1323_v4, %v1319_v27  ;;  %v1330_v9 = vrot.slane %v1329_v6, 4 }
 0x74d   : > { %v1325_v11 = vrot.slane %v1324_v8, 2  ;;  %v1331_v12 = vadd.f32 %v1330_v9, %v1329_v6 }
 0x74f   : > { %v1326_v13 = vadd.f32 %v1325_v11, %v1324_v8  ;;  %v1332_v14 = vrot.slane %v1331_v12, 2 }
 0x751   : > { %v1327_v15 = vrot.slane %v1326_v13, 1  ;;  %v1333_v16 = vadd.f32 %v1332_v14, %v1331_v12 }
 0x753   : > { %v1328_v17 = vadd.f32 %v1327_v15, %v1326_v13  ;;  %v1334_v18 = vrot.slane %v1333_v16, 1 }
 0x755   : > { %v1335_v19 = vadd.f32 %v1334_v18, %v1333_v16  ;;  %v1336_v20 = vmul.f32 0.125, %v1328_v17 }
 0x757   : > { %v1337_v21 = vmul.f32 0.125, %v1335_v19  ;;  %v1338_v22 = vmul.f32 %v1336_v20, %v1336_v20 }
 0x759   : > { %v1339_v23 = vsub.f32 %v1337_v21, %v1338_v22 }
 0x75b   : > { %v1340_v24 = vmax.f32 %v1339_v23, 0.0 }
 0x75d   : > { %v1341_v25 = vadd.f32 1e-05, %v1340_v24 }
 0x75f   : > { %2702 = vrsqrt.f32 %v1341_v25 }
 0x769   : > { %v2703_v28 = vpop.eup %2702 }
 0x76a   : > { %v1343_v29 = vmul.f32 %v2703_v28, %v1168_v26 }
 0x76c   : > { %v1344_v31 = vmul.f32 %v1343_v29, %v1336_v20  ;;  %v1349_v32 = vrot.slane %v1343_v29, %v2840_v49 }
 0x76e   : > { %v1345_v33 = vsub.f32 %v1169_v30, %v1344_v31  ;;  %v1350_v1 = vmul.f32 %v1349_v32, %v1319_v27 }
 0x770   : > { %v1354_v34 = vrot.slane %v1345_v33, %v2840_v49 }
 0x772   : > { %v1355_v35 = vadd.f32 %v1354_v34, %v1350_v1 }
 0x774   : > { %v1356_v36 = vmax.f32 %v1355_v35, 0.0 }
 0x776   : > { %2315 = vmatmul.mubr.f32.vlgmr.msra.gmra.mrb[10].mxu1 %v1356_v36 }
 0x849   : > { %v1493_v44 = vpop.f32.mrb[10].mxu1 }
 0x84a   : > { %v1494_v45 = vadd.f32 %v1493_v44, %v1423_v2  ;;  %v2316_v5 = vpop.f32.mrb[11].mxu1 }
 0x84c   : > { %v1501_v46 = vadd.f32 %v1672_v43, %v1494_v45 }
 0x84e   : > { %v1502_v49 = vmax.f32 %v1501_v46, 0.0 }
 0x850   : > { %2350 = vmatmul.mubr.f32.vlgmr.msra.gmra.mrb[12].mxu0 %v1502_v49 }
 0x923   : > { %v1590_v48 = vpop.f32.mrb[12].mxu0 }
 0x924   : > { %v1591_v50 = vadd.f32 %v1673_v47, %v1590_v48  ;;  %v2351_v0 = vpop.f32.mrb[13].mxu0 }
 0x926   : > { %1594 = vst [vmem:[%s153_s5] sm:$0xff] %v1591_v50 }
 0x927 PF: > { %s13_s9 = sadd.s32 1, %s2742_s9  }
 0x928   : > { %p10_p3 = scmp.ge.s32.totalorder %s13_s9, 6  }
 0x92a   :  { %12 = sbr.rel (!%p10_p3) target bundleno = 1 (0x1), region = 63 }
 0x931   :  { %1614 = vsyncpa [#allocation3], 1 }
 0x932   :  { %1616 = vsyncpa [#allocation3 + $0x1], 1 }

</bundles_post_ra>
